<compile_context>
chip_gen: v6e
topology: v6e:2x2x1
jax: 0.10.0
libtpu: 0.0.40
codegen_flags: <defaults>
</compile_context>

<pallas_src>
import functools

import jax
import jax.numpy as jnp
from jax.experimental import pallas as pl
from jax.experimental.pallas import tpu as pltpu


# After nearest-2x upsample, output row 2h+py reads original rows h-1+py+i for
# i in {0,1}; _TAP_SETS[py][i] lists which original 3x3 taps (ky) collapse onto
# effective tap i.  The same table applies to columns (px / kx).
_TAP_SETS = (((0,), (1, 2)), ((0, 1), (2,)))


def _phase_weights(weight_oihw, dtype):
    """(Cout, Cin, 3, 3) -> (4, 4*Cin, Cout) phase-folded, K-concatenated weights.

    Phase index p = py*2 + px.  Within K, block k = i*2 + j holds the effective
    2x2 tap (i, j) — this matches the LHS built in the kernel.
    """
    w = jnp.transpose(weight_oihw, (2, 3, 1, 0))  # (ky, kx, Cin, Cout)
    phases = []
    for py in range(2):
        for px in range(2):
            blocks = []
            for i in range(2):
                for j in range(2):
                    acc = None
                    for ky in _TAP_SETS[py][i]:
                        for kx in _TAP_SETS[px][j]:
                            t = w[ky, kx]
                            acc = t if acc is None else acc + t
                    blocks.append(acc)                      # (Cin, Cout)
            phases.append(jnp.concatenate(blocks, axis=0))  # (4*Cin, Cout)
    return jnp.stack(phases, axis=0).astype(dtype)          # (4, 4*Cin, Cout)


def _upsample_conv_kernel(x_ref, top_ref, bot_ref, w_ref, b_ref, o_ref, *,
                          compute_dtype):
    """One (image, row-strip) grid step.

    x_ref:   (1, TH, W, Cin)   main strip rows [s*TH, (s+1)*TH)
    top_ref: (1, 1,  W, Cin)   row s*TH-1 (clamped); zero-masked when s == 0
    bot_ref: (1, 1,  W, Cin)   row (s+1)*TH (clamped); zero-masked when s == last
    w_ref:   (4, 4*Cin, Cout)  phase-folded, K-concatenated weights (VMEM-resident)
    b_ref:   (1, Cout)         bias (f32)
    o_ref:   (1, 2*TH, W, 2*Cout) interleaved output block:
             o[0, 2h+py, w, px*Cout + c] == y[2(s*TH+h)+py, 2w+px, c]
    """
    th, wdim, cin = x_ref.shape[1], x_ref.shape[2], x_ref.shape[3]
    cout = b_ref.shape[1]
    s = pl.program_id(1)
    n_strips = pl.num_programs(1)

    # --- Row halos (zero at image top/bottom boundaries). -------------------
    main = x_ref[0]                                   # (TH, W, Cin)
    top = jnp.where(s == 0, jnp.zeros_like(top_ref[0]), top_ref[0])
    bot = jnp.where(s == n_strips - 1, jnp.zeros_like(bot_ref[0]), bot_ref[0])
    xs = jnp.concatenate([top, main, bot], axis=0).astype(compute_dtype)
    # xs: (TH+2, W, Cin) — padded-row strip at original resolution.

    # --- Column shifts hoisted (built once, cast once). ---------------------
    # x_dx[r, w] == x_padded_cols[r, w + dx]  (zero-padded by 1 column each side)
    zcol = jnp.zeros((th + 2, 1, cin), dtype=compute_dtype)
    x0 = jnp.concatenate([zcol, xs[:, :wdim - 1, :]], axis=1)
    x1 = xs
    x2 = jnp.concatenate([xs[:, 1:, :], zcol], axis=1)

    # --- K-concatenated LHS slabs, shared across row phases. ----------------
    # d_px[r] = [x_px[r] | x_{px+1}[r] | x_px[r+1] | x_{px+1}[r+1]]   (lanes)
    # so per phase (py, px) the LHS is just the free row view d_px[py:py+TH].
    d0 = jnp.concatenate([x0[:-1], x1[:-1], x0[1:], x1[1:]], axis=-1)
    d1 = jnp.concatenate([x1[:-1], x2[:-1], x1[1:], x2[1:]], axis=-1)
    d_by_px = (d0, d1)                                # each (TH+1, W, 4*Cin)

    bias = b_ref[...]                                 # (1, Cout), f32

    # --- 4 phases x 1 MXU matmul each (M = TH*W, K = 4*Cin, N = Cout). ------
    rows = []
    for py in range(2):
        parts = []
        for px in range(2):
            lhs = d_by_px[px][py:py + th].reshape(th * wdim, 4 * cin)
            res = jnp.dot(lhs, w_ref[py * 2 + px],
                          preferred_element_type=jnp.float32)
            res = res + bias
            parts.append(res.reshape(th, wdim, cout))
        # px interleave -> lanes: (TH, W, 2*Cout)
        rows.append(jnp.concatenate(parts, axis=-1))
    # py interleave -> rows: (TH, 2, W, 2*Cout) -> (2*TH, W, 2*Cout)
    out = jnp.stack(rows, axis=1).reshape(2 * th, wdim, 2 * cout)
    o_ref[0] = out.astype(o_ref.dtype)                # one lane-dense store


def _vmem_limit_bytes():
    """Generation-aware VMEM limit: big tiles on v5e/v6e, conservative on v7x."""
    cap = 64 * 1024 * 1024
    try:
        cap = int(pltpu.get_tpu_info().vmem_capacity_bytes)
    except Exception:
        pass
    if cap >= 96 * 1024 * 1024:        # v5e / v6e: 128 MiB physical VMEM
        return 64 * 1024 * 1024
    return 44 * 1024 * 1024            # v7x: 64 MiB physical VMEM


def _pick_strip_rows(N, H, W, Cin, Cout, in_item, out_item, cd_item, budget):
    """Largest divisor of H whose per-step working set fits the budget."""
    best = None
    for th in range(1, H + 1):
        if H % th:
            continue
        if N == 1 and H > 1 and th == H:
            continue  # keep >= 2 grid points so v7x's 2nd TensorCore has work
        in_b = 2 * th * W * Cin * in_item + 4 * W * Cin * in_item   # strip + halos (2x buffered)
        out_b = 2 * (2 * th) * W * (2 * Cout) * out_item            # output block (2x buffered)
        tmp_b = (11 * (th + 2) * W * Cin * cd_item                  # xs, x0, x2, d0, d1
                 + 6 * th * W * Cout * 4                            # f32 matmul results
                 + 2 * th * W * 2 * Cout * out_item)                # assembled out block
        if in_b + out_b + tmp_b <= budget:
            best = th
    if best is None:
        # TODO(synk): add W (and Cout) tiling for feature maps where even a
        # single-row strip exceeds the VMEM budget.
        raise ValueError(
            f"No row strip fits the VMEM budget ({budget} B) for H={H}, W={W}, "
            f"Cin={Cin}, Cout={Cout}; W tiling would be required.")
    return best


def upsample_conv_interleaved(x_nhwc, weight_oihw, bias, *, strip_rows=None,
                              compute_dtype=jnp.float32, vmem_limit_bytes=None):
    """Fused nearest-2x upsample + 3x3 'same' conv.

    Returns an interleaved array of shape (N, 2H, W, 2*Cout) with
    out[n, 2h+py, w, px*Cout + c] == y[n, 2h+py, 2w+px, c], so the NHWC result
    is a pure reshape of this array (no extra HBM pass).
    """
    N, H, W, Cin = x_nhwc.shape
    Cout = weight_oihw.shape[0]
    out_dtype = x_nhwc.dtype

    in_item = x_nhwc.dtype.itemsize
    out_item = jnp.dtype(out_dtype).itemsize
    cd_item = jnp.dtype(compute_dtype).itemsize

    if vmem_limit_bytes is None:
        vmem_limit_bytes = _vmem_limit_bytes()

    # Weights/bias stay VMEM-resident (constant index maps).  Budget them as
    # double-buffered.  TODO(synk): pipeline_mode=pl.Buffered(1) on the weight
    # and bias specs would halve this once single-buffering is guaranteed stable.
    fixed = 2 * (4 * (4 * Cin) * Cout * cd_item + Cout * 4)
    if strip_rows is None:
        budget = vmem_limit_bytes - fixed - 2 * 1024 * 1024
        if budget <= 0:
            raise ValueError("Folded weights alone exceed the VMEM budget; use "
                             "bfloat16 compute_dtype or channel tiling.")
        strip_rows = _pick_strip_rows(N, H, W, Cin, Cout,
                                      in_item, out_item, cd_item, budget)
    th = int(strip_rows)
    assert H % th == 0, (H, th)
    n_strips = H // th

    w_eff = _phase_weights(weight_oihw, compute_dtype)     # (4, 4*Cin, Cout)
    b2 = bias.reshape(1, Cout).astype(jnp.float32)

    kernel = functools.partial(_upsample_conv_kernel, compute_dtype=compute_dtype)

    cost = pl.CostEstimate(
        flops=2 * 16 * N * H * W * Cin * Cout,
        transcendentals=0,
        bytes_accessed=(N * H * W * Cin * in_item              # input (read once)
                        + N * 2 * H * W * 2 * Cout * out_item  # output
                        + 16 * Cin * Cout * cd_item),          # folded weights
    )

    return pl.pallas_call(
        kernel,
        out_shape=jax.ShapeDtypeStruct((N, 2 * H, W, 2 * Cout), out_dtype),
        grid=(N, n_strips),
        in_specs=[
            # Main th-row strip: plain blocked window, no HBM pad needed.
            pl.BlockSpec((1, th, W, Cin), lambda n, s: (n, s, 0, 0)),
            # 1-row top / bottom halos.  Row block size 1 => the block index is
            # the row index; clamp it in-range and zero-mask inside the kernel.
            pl.BlockSpec((1, 1, W, Cin),
                         lambda n, s: (n, jnp.maximum(s * th - 1, 0), 0, 0)),
            pl.BlockSpec((1, 1, W, Cin),
                         lambda n, s: (n, jnp.minimum((s + 1) * th, H - 1), 0, 0)),
            # Constant index maps: weights & bias stay VMEM-resident.
            pl.BlockSpec((4, 4 * Cin, Cout), lambda n, s: (0, 0, 0)),
            pl.BlockSpec((1, Cout), lambda n, s: (0, 0)),
        ],
        out_specs=pl.BlockSpec((1, 2 * th, W, 2 * Cout),
                               lambda n, s: (n, s, 0, 0)),
        compiler_params=pltpu.CompilerParams(
            dimension_semantics=("parallel", "parallel"),
            vmem_limit_bytes=vmem_limit_bytes,
        ),
        cost_estimate=cost,
    )(x_nhwc, x_nhwc, x_nhwc, w_eff, b2)


def upsample_forward(x_nchw, weight_oihw, bias, use_conv=True, *,
                     strip_rows=None, compute_dtype=jnp.float32):
    """Equivalent of Upsample.forward for NCHW inputs (PyTorch parity)."""
    N, C, H, W = x_nchw.shape
    if not use_conv:
        up = jnp.broadcast_to(x_nchw[:, :, :, None, :, None], (N, C, H, 2, W, 2))
        return up.reshape(N, C, 2 * H, 2 * W)

    Cout = weight_oihw.shape[0]
    x_nhwc = jnp.transpose(x_nchw, (0, 2, 3, 1))
    out = upsample_conv_interleaved(x_nhwc, weight_oihw, bias,
                                    strip_rows=strip_rows,
                                    compute_dtype=compute_dtype)
    # Fold the phase->pixel interleave into the (anyway required) transpose back
    # to NCHW: (n, hh, w, px, c) -> (n, c, hh, w, px) -> (N, Cout, 2H, 2W).
    out5 = out.reshape(N, 2 * H, W, 2, Cout)
    return jnp.transpose(out5, (0, 4, 1, 2, 3)).reshape(N, Cout, 2 * H, 2 * W)


def upsample_forward_nhwc(x_nhwc, weight_oihw, bias, *, strip_rows=None,
                          compute_dtype=jnp.float32):
    """NHWC-in / NHWC-out variant: the output interleave is a pure reshape."""
    N, H, W, C = x_nhwc.shape
    Cout = weight_oihw.shape[0]
    out = upsample_conv_interleaved(x_nhwc, weight_oihw, bias,
                                    strip_rows=strip_rows,
                                    compute_dtype=compute_dtype)
    return out.reshape(N, 2 * H, 2 * W, Cout)


def _reference(x_nchw, weight_oihw, bias, use_conv=True):
    """Plain-JAX reference mirroring the torch semantics."""
    N, C, H, W = x_nchw.shape
    up = jnp.broadcast_to(x_nchw[:, :, :, None, :, None], (N, C, H, 2, W, 2))
    up = up.reshape(N, C, 2 * H, 2 * W)
    if not use_conv:
        return up
    y = jax.lax.conv_general_dilated(
        up, weight_oihw, window_strides=(1, 1), padding=((1, 1), (1, 1)),
        dimension_numbers=("NCHW", "OIHW", "NCHW"))
    return y + bias[None, :, None, None]


if __name__ == "__main__":
    key = jax.random.PRNGKey(0)
    kx, kw, kb = jax.random.split(key, 3)

    N, C, H, W = 2, 4, 16, 16
    x = jax.random.normal(kx, (N, C, H, W), dtype=jnp.float32)

    # Deterministic synthetic Conv2d(C, C, 3) parameters.
    weight = 0.1 * jax.random.normal(kw, (C, C, 3, 3), dtype=jnp.float32)
    bias = 0.05 * jax.random.normal(kb, (C,), dtype=jnp.float32)

    ref = jax.block_until_ready(_reference(x, weight, bias))

    # (a) strip_rows=8 -> 2 row strips per image: interior-halo path exercised.
    fwd_strip = jax.jit(functools.partial(upsample_forward, strip_rows=8))
    out_a = jax.block_until_ready(fwd_strip(x, weight, bias))
    assert out_a.shape == (N, C, 2 * H, 2 * W), out_a.shape
    err_a = float(jnp.max(jnp.abs(out_a - ref)))
    assert err_a < 1e-4, err_a

    # (b) automatic, generation-aware strip selection.
    fwd_auto = jax.jit(upsample_forward)
    out_b = jax.block_until_ready(fwd_auto(x, weight, bias))
    err_b = float(jnp.max(jnp.abs(out_b - ref)))
    assert err_b < 1e-4, err_b

    # (c) NHWC entry point (output interleave is a pure reshape).
    x_nhwc = jnp.transpose(x, (0, 2, 3, 1))
    out_c = jax.block_until_ready(jax.jit(upsample_forward_nhwc)(x_nhwc, weight, bias))
    err_c = float(jnp.max(jnp.abs(jnp.transpose(out_c, (0, 3, 1, 2)) - ref)))
    assert err_c < 1e-4, err_c

    # (d) use_conv=False path (pure nearest-2x upsample).
    up_only = jax.block_until_ready(
        jax.jit(functools.partial(upsample_forward, use_conv=False))(x, weight, bias))
    ref_up = _reference(x, weight, bias, use_conv=False)
    assert float(jnp.max(jnp.abs(up_only - ref_up))) == 0.0

    print("KERNEL_OK")
</pallas_src>

<mosaic_0001>
module attributes {stable_mosaic.version = 11 : i64} {
  func.func @_upsample_conv_kernel(%arg0: i32, %arg1: i32, %arg2: memref<1x8x16x4xf32, #tpu.memory_space<vmem>>, %arg3: memref<1x1x16x4xf32, #tpu.memory_space<vmem>>, %arg4: memref<1x1x16x4xf32, #tpu.memory_space<vmem>>, %arg5: memref<4x16x4xf32, #tpu.memory_space<vmem>>, %arg6: memref<1x4xf32, #tpu.memory_space<vmem>>, %arg7: memref<1x16x16x8xf32, #tpu.memory_space<vmem>>) attributes {dimension_semantics = [#tpu.dimension_semantics<parallel>, #tpu.dimension_semantics<parallel>], iteration_bounds = array<i64: 2, 2>, scalar_prefetch = 0 : i64, scratch_operands = 0 : i64, tpu.core_type = #tpu.core_type<tc>, window_params = [{transform_indices = @transform_0, window_bounds = array<i64: 1, 8, 16, 4>}, {transform_indices = @transform_1, window_bounds = array<i64: 1, 1, 16, 4>}, {transform_indices = @transform_2, window_bounds = array<i64: 1, 1, 16, 4>}, {pipeline_mode = #tpu.pipeline_mode<synchronous>, transform_indices = @transform_3, window_bounds = array<i64: 4, 16, 4>}, {pipeline_mode = #tpu.pipeline_mode<synchronous>, transform_indices = @transform_4, window_bounds = array<i64: 1, 4>}, {transform_indices = @transform_5, window_bounds = array<i64: 1, 16, 16, 8>}]} {
    %c0 = arith.constant 0 : index
    %c0_0 = arith.constant 0 : index
    %c0_1 = arith.constant 0 : index
    %c0_2 = arith.constant 0 : index
    %0 = vector.load %arg2[%c0, %c0_0, %c0_1, %c0_2] : memref<1x8x16x4xf32, #tpu.memory_space<vmem>>, vector<1x8x16x4xf32>
    %1 = vector.shape_cast %0 : vector<1x8x16x4xf32> to vector<8x16x4xf32>
    %c0_i32 = arith.constant 0 : i32
    %2 = arith.cmpi eq, %arg1, %c0_i32 : i32
    %cst = arith.constant 0.000000e+00 : f32
    %3 = vector.broadcast %cst : f32 to vector<1x16x4xf32>
    %c0_3 = arith.constant 0 : index
    %c0_4 = arith.constant 0 : index
    %c0_5 = arith.constant 0 : index
    %c0_6 = arith.constant 0 : index
    %4 = vector.load %arg3[%c0_3, %c0_4, %c0_5, %c0_6] : memref<1x1x16x4xf32, #tpu.memory_space<vmem>>, vector<1x1x16x4xf32>
    %5 = vector.shape_cast %4 : vector<1x1x16x4xf32> to vector<1x16x4xf32>
    %6 = arith.select %2, %3, %5 : vector<1x16x4xf32>
    %c1_i32 = arith.constant 1 : i32
    %7 = arith.cmpi eq, %arg1, %c1_i32 : i32
    %cst_7 = arith.constant 0.000000e+00 : f32
    %8 = vector.broadcast %cst_7 : f32 to vector<1x16x4xf32>
    %c0_8 = arith.constant 0 : index
    %c0_9 = arith.constant 0 : index
    %c0_10 = arith.constant 0 : index
    %c0_11 = arith.constant 0 : index
    %9 = vector.load %arg4[%c0_8, %c0_9, %c0_10, %c0_11] : memref<1x1x16x4xf32, #tpu.memory_space<vmem>>, vector<1x1x16x4xf32>
    %10 = vector.shape_cast %9 : vector<1x1x16x4xf32> to vector<1x16x4xf32>
    %11 = arith.select %7, %8, %10 : vector<1x16x4xf32>
    %12 = tpu.concatenate %6, %1, %11 in 0 : vector<1x16x4xf32>, vector<8x16x4xf32>, vector<1x16x4xf32> -> vector<10x16x4xf32>
    %cst_12 = arith.constant 0.000000e+00 : f32
    %13 = vector.broadcast %cst_12 : f32 to vector<10x1x4xf32>
    %14 = vector.extract_strided_slice %12 {offsets = [0, 0, 0], sizes = [10, 15, 4], strides = [1, 1, 1]} : vector<10x16x4xf32> to vector<10x15x4xf32>
    %15 = tpu.concatenate %13, %14 in 1 : vector<10x1x4xf32>, vector<10x15x4xf32> -> vector<10x16x4xf32>
    %16 = vector.extract_strided_slice %12 {offsets = [0, 1, 0], sizes = [10, 15, 4], strides = [1, 1, 1]} : vector<10x16x4xf32> to vector<10x15x4xf32>
    %17 = tpu.concatenate %16, %13 in 1 : vector<10x15x4xf32>, vector<10x1x4xf32> -> vector<10x16x4xf32>
    %18 = vector.extract_strided_slice %15 {offsets = [0, 0, 0], sizes = [9, 16, 4], strides = [1, 1, 1]} : vector<10x16x4xf32> to vector<9x16x4xf32>
    %19 = vector.extract_strided_slice %12 {offsets = [0, 0, 0], sizes = [9, 16, 4], strides = [1, 1, 1]} : vector<10x16x4xf32> to vector<9x16x4xf32>
    %20 = vector.extract_strided_slice %15 {offsets = [1, 0, 0], sizes = [9, 16, 4], strides = [1, 1, 1]} : vector<10x16x4xf32> to vector<9x16x4xf32>
    %21 = vector.extract_strided_slice %12 {offsets = [1, 0, 0], sizes = [9, 16, 4], strides = [1, 1, 1]} : vector<10x16x4xf32> to vector<9x16x4xf32>
    %22 = tpu.concatenate %18, %19, %20, %21 in 2 : vector<9x16x4xf32>, vector<9x16x4xf32>, vector<9x16x4xf32>, vector<9x16x4xf32> -> vector<9x16x16xf32>
    %23 = vector.extract_strided_slice %12 {offsets = [0, 0, 0], sizes = [9, 16, 4], strides = [1, 1, 1]} : vector<10x16x4xf32> to vector<9x16x4xf32>
    %24 = vector.extract_strided_slice %17 {offsets = [0, 0, 0], sizes = [9, 16, 4], strides = [1, 1, 1]} : vector<10x16x4xf32> to vector<9x16x4xf32>
    %25 = vector.extract_strided_slice %12 {offsets = [1, 0, 0], sizes = [9, 16, 4], strides = [1, 1, 1]} : vector<10x16x4xf32> to vector<9x16x4xf32>
    %26 = vector.extract_strided_slice %17 {offsets = [1, 0, 0], sizes = [9, 16, 4], strides = [1, 1, 1]} : vector<10x16x4xf32> to vector<9x16x4xf32>
    %27 = tpu.concatenate %23, %24, %25, %26 in 2 : vector<9x16x4xf32>, vector<9x16x4xf32>, vector<9x16x4xf32>, vector<9x16x4xf32> -> vector<9x16x16xf32>
    %c0_13 = arith.constant 0 : index
    %c0_14 = arith.constant 0 : index
    %28 = vector.load %arg6[%c0_13, %c0_14] : memref<1x4xf32, #tpu.memory_space<vmem>>, vector<1x4xf32>
    %29 = vector.extract_strided_slice %22 {offsets = [0, 0, 0], sizes = [8, 16, 16], strides = [1, 1, 1]} : vector<9x16x16xf32> to vector<8x16x16xf32>
    %30 = vector.shape_cast %29 : vector<8x16x16xf32> to vector<128x16xf32>
    %c0_15 = arith.constant 0 : index
    %c0_16 = arith.constant 0 : index
    %c0_17 = arith.constant 0 : index
    %31 = vector.load %arg5[%c0_15, %c0_16, %c0_17] : memref<4x16x4xf32, #tpu.memory_space<vmem>>, vector<1x16x4xf32>
    %32 = vector.shape_cast %31 : vector<1x16x4xf32> to vector<16x4xf32>
    %cst_18 = arith.constant dense<0.000000e+00> : vector<128x4xf32>
    %33 = tpu.matmul %30, %32, %cst_18 {dimension_numbers = #tpu.dot_dimension_numbers<[1], [0], [0], [1], [0, 0, 1, 1], [], []>} : vector<128x16xf32>, vector<16x4xf32>, vector<128x4xf32> -> vector<128x4xf32>
    %34 = vector.broadcast %28 : vector<1x4xf32> to vector<128x4xf32>
    %35 = arith.addf %33, %34 : vector<128x4xf32>
    %36 = vector.shape_cast %35 : vector<128x4xf32> to vector<8x16x4xf32>
    %37 = vector.extract_strided_slice %27 {offsets = [0, 0, 0], sizes = [8, 16, 16], strides = [1, 1, 1]} : vector<9x16x16xf32> to vector<8x16x16xf32>
    %38 = vector.shape_cast %37 : vector<8x16x16xf32> to vector<128x16xf32>
    %c1 = arith.constant 1 : index
    %c0_19 = arith.constant 0 : index
    %c0_20 = arith.constant 0 : index
    %39 = vector.load %arg5[%c1, %c0_19, %c0_20] : memref<4x16x4xf32, #tpu.memory_space<vmem>>, vector<1x16x4xf32>
    %40 = vector.shape_cast %39 : vector<1x16x4xf32> to vector<16x4xf32>
    %cst_21 = arith.constant dense<0.000000e+00> : vector<128x4xf32>
    %41 = tpu.matmul %38, %40, %cst_21 {dimension_numbers = #tpu.dot_dimension_numbers<[1], [0], [0], [1], [0, 0, 1, 1], [], []>} : vector<128x16xf32>, vector<16x4xf32>, vector<128x4xf32> -> vector<128x4xf32>
    %42 = vector.broadcast %28 : vector<1x4xf32> to vector<128x4xf32>
    %43 = arith.addf %41, %42 : vector<128x4xf32>
    %44 = vector.shape_cast %43 : vector<128x4xf32> to vector<8x16x4xf32>
    %45 = tpu.concatenate %36, %44 in 2 : vector<8x16x4xf32>, vector<8x16x4xf32> -> vector<8x16x8xf32>
    %46 = vector.extract_strided_slice %22 {offsets = [1, 0, 0], sizes = [8, 16, 16], strides = [1, 1, 1]} : vector<9x16x16xf32> to vector<8x16x16xf32>
    %47 = vector.shape_cast %46 : vector<8x16x16xf32> to vector<128x16xf32>
    %c2 = arith.constant 2 : index
    %c0_22 = arith.constant 0 : index
    %c0_23 = arith.constant 0 : index
    %48 = vector.load %arg5[%c2, %c0_22, %c0_23] : memref<4x16x4xf32, #tpu.memory_space<vmem>>, vector<1x16x4xf32>
    %49 = vector.shape_cast %48 : vector<1x16x4xf32> to vector<16x4xf32>
    %cst_24 = arith.constant dense<0.000000e+00> : vector<128x4xf32>
    %50 = tpu.matmul %47, %49, %cst_24 {dimension_numbers = #tpu.dot_dimension_numbers<[1], [0], [0], [1], [0, 0, 1, 1], [], []>} : vector<128x16xf32>, vector<16x4xf32>, vector<128x4xf32> -> vector<128x4xf32>
    %51 = vector.broadcast %28 : vector<1x4xf32> to vector<128x4xf32>
    %52 = arith.addf %50, %51 : vector<128x4xf32>
    %53 = vector.shape_cast %52 : vector<128x4xf32> to vector<8x16x4xf32>
    %54 = vector.extract_strided_slice %27 {offsets = [1, 0, 0], sizes = [8, 16, 16], strides = [1, 1, 1]} : vector<9x16x16xf32> to vector<8x16x16xf32>
    %55 = vector.shape_cast %54 : vector<8x16x16xf32> to vector<128x16xf32>
    %c3 = arith.constant 3 : index
    %c0_25 = arith.constant 0 : index
    %c0_26 = arith.constant 0 : index
    %56 = vector.load %arg5[%c3, %c0_25, %c0_26] : memref<4x16x4xf32, #tpu.memory_space<vmem>>, vector<1x16x4xf32>
    %57 = vector.shape_cast %56 : vector<1x16x4xf32> to vector<16x4xf32>
    %cst_27 = arith.constant dense<0.000000e+00> : vector<128x4xf32>
    %58 = tpu.matmul %55, %57, %cst_27 {dimension_numbers = #tpu.dot_dimension_numbers<[1], [0], [0], [1], [0, 0, 1, 1], [], []>} : vector<128x16xf32>, vector<16x4xf32>, vector<128x4xf32> -> vector<128x4xf32>
    %59 = vector.broadcast %28 : vector<1x4xf32> to vector<128x4xf32>
    %60 = arith.addf %58, %59 : vector<128x4xf32>
    %61 = vector.shape_cast %60 : vector<128x4xf32> to vector<8x16x4xf32>
    %62 = tpu.concatenate %53, %61 in 2 : vector<8x16x4xf32>, vector<8x16x4xf32> -> vector<8x16x8xf32>
    %63 = vector.shape_cast %45 : vector<8x16x8xf32> to vector<8x1x16x8xf32>
    %64 = vector.shape_cast %62 : vector<8x16x8xf32> to vector<8x1x16x8xf32>
    %65 = tpu.concatenate %63, %64 in 1 : vector<8x1x16x8xf32>, vector<8x1x16x8xf32> -> vector<8x2x16x8xf32>
    %66 = vector.shape_cast %65 : vector<8x2x16x8xf32> to vector<16x16x8xf32>
    %c0_28 = arith.constant 0 : index
    %c0_29 = arith.constant 0 : index
    %c0_30 = arith.constant 0 : index
    %c0_31 = arith.constant 0 : index
    %67 = vector.load %arg7[%c0_28, %c0_29, %c0_30, %c0_31] : memref<1x16x16x8xf32, #tpu.memory_space<vmem>>, vector<1x16x16x8xf32>
    %68 = vector.shape_cast %67 : vector<1x16x16x8xf32> to vector<16x16x8xf32>
    %69 = vector.shape_cast %66 : vector<16x16x8xf32> to vector<1x16x16x8xf32>
    tpu.vector_store %arg7[%c0_28, %c0_29, %c0_30, %c0_31], %69 {strides = array<i32>} : memref<1x16x16x8xf32, #tpu.memory_space<vmem>>, vector<1x16x16x8xf32>,
    return
  }
  func.func @transform_0(%arg0: i32, %arg1: i32) -> (i32, i32, i32, i32) {
    %c0_i32 = arith.constant 0 : i32
    %c0_i32_0 = arith.constant 0 : i32
    %c0_i32_1 = arith.constant 0 : i32
    return %arg0, %arg1, %c0_i32, %c0_i32_0 : i32, i32, i32, i32
  }
  func.func @transform_1(%arg0: i32, %arg1: i32) -> (i32, i32, i32, i32) {
    %c8_i32 = arith.constant 8 : i32
    %0 = arith.muli %arg1, %c8_i32 : i32
    %c1_i32 = arith.constant 1 : i32
    %1 = arith.subi %0, %c1_i32 : i32
    %c0_i32 = arith.constant 0 : i32
    %2 = arith.maxsi %1, %c0_i32 : i32
    %c0_i32_0 = arith.constant 0 : i32
    %c0_i32_1 = arith.constant 0 : i32
    %c0_i32_2 = arith.constant 0 : i32
    return %arg0, %2, %c0_i32_0, %c0_i32_1 : i32, i32, i32, i32
  }
  func.func @transform_2(%arg0: i32, %arg1: i32) -> (i32, i32, i32, i32) {
    %c1_i32 = arith.constant 1 : i32
    %0 = arith.addi %arg1, %c1_i32 : i32
    %c8_i32 = arith.constant 8 : i32
    %1 = arith.muli %0, %c8_i32 : i32
    %c15_i32 = arith.constant 15 : i32
    %2 = arith.minsi %1, %c15_i32 : i32
    %c0_i32 = arith.constant 0 : i32
    %c0_i32_0 = arith.constant 0 : i32
    %c0_i32_1 = arith.constant 0 : i32
    return %arg0, %2, %c0_i32, %c0_i32_0 : i32, i32, i32, i32
  }
  func.func @transform_3(%arg0: i32, %arg1: i32) -> (i32, i32, i32) {
    %c0_i32 = arith.constant 0 : i32
    %c0_i32_0 = arith.constant 0 : i32
    %c0_i32_1 = arith.constant 0 : i32
    %c0_i32_2 = arith.constant 0 : i32
    return %c0_i32, %c0_i32_0, %c0_i32_1 : i32, i32, i32
  }
  func.func @transform_4(%arg0: i32, %arg1: i32) -> (i32, i32) {
    %c0_i32 = arith.constant 0 : i32
    %c0_i32_0 = arith.constant 0 : i32
    %c0_i32_1 = arith.constant 0 : i32
    return %c0_i32, %c0_i32_0 : i32, i32
  }
  func.func @transform_5(%arg0: i32, %arg1: i32) -> (i32, i32, i32, i32) {
    %c0_i32 = arith.constant 0 : i32
    %c0_i32_0 = arith.constant 0 : i32
    %c0_i32_1 = arith.constant 0 : i32
    return %arg0, %arg1, %c0_i32, %c0_i32_0 : i32, i32, i32, i32
  }
}

</mosaic_0001>

<bundles_post_ra>
// kernel: upsample_forward.1
= control target key start
LH: loop header
LB: loop body
LE: loop exit
PB: predicated region body
PF: predicated region fallthrough
CT: control target
= control target key end

     0   :  { %s2479_s18 = smov 0   ;;  %s2481_s19 = smov 0   ;;  %s3430_s0 = inlined_call_operand.vmem [shape: f32[2,16,16,4], index: 0, kind: input, shape index: {}, may-alias: {0,1,2}]   ;;  %s3431_s1 = inlined_call_operand.vmem [shape: f32[2,16,16,4], index: 1, kind: input, shape index: {}, may-alias: {0,1,2}]   ;;  %s3432_s2 = inlined_call_operand.vmem [shape: f32[2,16,16,4], index: 2, kind: input, shape index: {}, may-alias: {0,1,2}]   ;;  %s3433_s3 = inlined_call_operand.vmem [shape: f32[4,16,4], index: 3, kind: input, shape index: {}]   ;;  %s3434_s4 = inlined_call_operand.vmem [shape: f32[1,4], index: 4, kind: input, shape index: {}]   ;;  %s3435_s5 = inlined_call_operand.vmem [shape: f32[2,32,16,8], index: 5, kind: output, shape index: {}]  }
   0x1   :  { %s2483_s20 = smov 0   ;;  %s2485_s21 = smov 0  }
   0x2   :  { %s2487_s22 = smov 0  }
   0x3 LB: > { %s24_s23 = sadd.s32 1, %s2436_s20  ;;  %s27_s24 = sadd.s32 1, %s2440_s21  ;;  %s2444_s22 = sphi %s2487_s22, %s15_s22   ;;  %s2440_s21 = sphi %s2485_s21, %s3440_s21   ;;  %s2436_s20 = sphi %s2483_s20, %s3439_s20   ;;  %s2432_s19 = sphi %s2481_s19, %s3438_s19   ;;  %s2428_s18 = sphi %s2479_s18, %s3437_s18  }
   0x4   : > { %p25_p0 = scmp.ge.s32.totalorder %s24_s23, 2  ;;  %p2060_p1 = scmp.ge.s32.totalorder %s2444_s22, 1 }
   0x5   : > { %p273_p2 = scmp.lt.s32.totalorder %s2444_s22, 5 }
   0x6   : > { %s3442_s23 = smov (%p25_p0, %s24_s23), 0  ;;  %s3444_s24 = smov (!%p25_p0, %s27_s24), %s2440_s21 }
   0x7   : > { %p274_p3 = pnand %p2060_p1, %p273_p2  ;;  %p29_p4 = scmp.ge.s32.totalorder %s3444_s24, 2 }
   0x8   : > { %s2512_s25 = sshll.u32 (!%p274_p3), %s2428_s18, 3  ;;  %p338_p5 = scmp.lt.s32.totalorder (!%p274_p3), %s2432_s19, 1 }
   0x9   : > { %s3446_s24 = smov (%p29_p4, %s3444_s24), 0  ;;  %277 = sbr.rel (%p274_p3) target bundleno = 578 (0x242), region = 40 }
   0xa   : > { %p340_p6 = scmp.lt.s32.totalorder (!%p274_p3), %s2512_s25, 15  ;;  %s2446_s9 = smov (!%p274_p3), 8  }
   0xb   : > { %s2066_s10 = sadd.s32 (!%p274_p3), 4294967295, %s2512_s25  ;;  %p409_p8 = scmp.eq.s32.totalorder (!%p274_p3), %s2428_s18, 0 }
   0xc   : > { %p350_p7 = scmp.gt.s32.totalorder (!%p274_p3), %s2066_s10, 0  ;;  %p2067_p9 = scmp.lt.s32.totalorder (!%p274_p3), %s2066_s10, 15 }
   0xd   : > { %s2447_s11 = smov (!%p274_p3), 12   ;;  %s2448_s12 = smov (!%p274_p3), 4  }
   0xe   : > { %s3448_s19 = smov (!%p338_p5, %s2432_s19), 1  ;;  %vm505_vm0 = vcmask 1046528   ;;  %s3450_s10 = smov (!%p350_p7, %s2066_s10), 0  ;;  %v2104_v7 = vld [vmem:[%s3433_s3 + $0x18] sm:$0xff]  ;;  %v2103_v9 = vld [vmem:[%s3433_s3 + $0x10] sm:$0xff]  ;;  %vm445_vm1 = vcmask 1040384  }
   0xf   : > { %s341_s26 = scalar_select %p340_p6, %s2512_s25, 15  ;;  %2267 = vmatprep.subr.mxu1 %v2104_v7  ;;  %v2661_v40 = vld [vmem:[%s3433_s3 + $0x38] sm:$0xff]  ;;  %v1012_v62 = vld [vmem:[%s3433_s3 + $0x8] sm:$0xff]  ;;  %v1011_v63 = vld [vmem:[%s3433_s3] sm:$0xff]  ;;  %vm727_vm2 = vcmask 31744   ;;  %vm765_vm3 = vcmask 97280  }
  0x10   : > { %s2519_s27 = sshll.u32 %s3448_s19, 5  ;;  %s3452_s10 = smov (!%p2067_p9, %s3450_s10), 15  ;;  %2268 = vmatpush3.msra.mxu1 %v2104_v7  ;;  %2239 = vmatprep.subr.mxu0 %v1012_v62  ;;  %vm746_vm4 = vcmask 64512   ;;  %vm1019_vm5 = vcmask 130048  }
  0x11   : > { %s2062_s28 = sshll.u32 %s341_s26, 1  ;;  %s2166_s13 = sadd.s32 8, %s2512_s25  ;;  %2269 = vmatprep.subr.mxu1 %v2103_v9  ;;  %2240 = vmatpush3.msra.mxu0 %v1012_v62 }
  0x12   : > { %s344_s29 = sadd.s32 %s2519_s27, %s2062_s28  ;;  %s2072_s16 = sshll.u32 %s3452_s10, 1  ;;  %2270 = vmatpush3.msra.mxu1 %v2103_v9  ;;  %2241 = vmatprep.subr.mxu0 %v1011_v63 }
  0x13   : > { %s2064_s30 = sshll.u32 %s344_s29, 3  ;;  %s358_s17 = sadd.s32 %s2072_s16, %s2519_s27  ;;  %2323 = vmatprep.subr.mxu1 %v2661_v40  ;;  %2242 = vmatpush3.msra.mxu0 %v1011_v63 }
  0x14   : > { %s2525_s8 = scalar_lea.vmem %s3430_s0, %s2064_s30  ;;  %s2074_s26 = sshll.u32 %s358_s17, 3 }
  0x15   : > { %v2528_v0 = vld [vmem:[%s2525_s8 + $0x10] sm:$0xff]  ;;  %v2531_v1 = vld [vmem:[%s2525_s8] sm:$0xff]  ;;  %v2534_v2 = vld [vmem:[%s2525_s8 + $0x8] sm:$0xff]  ;;  %p2559_p10 = scmp.lt.s32.totalorder %s2166_s13, 15  ;;  %s360_s7 = scalar_lea.vmem %s3431_s1, %s2074_s26 }
  0x16   : > { %851 = vrot.lane.b32.xlu0 %v2528_v0, %s2446_s9  ;;  %847 = vrot.lane.b32.xlu1 %v2531_v1, %s2446_s9  ;;  %v509_v3 = vrot.slane %v2531_v1, 1  ;;  %v510_v4 = vrot.slane %v2534_v2, 1  ;;  %v2557_v8 = vld [vmem:[%s2525_s8 + $0x18] sm:$0xff]  ;;  %p417_p11 = scmp.eq.s32.totalorder %s2428_s18, 1  ;;  %v512_v18 = vrot.slane %v2528_v0, 1  ;;  %v2594_v19 = vld [vmem:[%s2525_s8 + $0x28] sm:$0xff] }
  0x17   : > { %s2395_s10 = scalar_select %p409_p8, 0, 255  ;;  %v513_v10 = vrot.slane %v2557_v8, 1  ;;  %v516_v21 = vrot.slane %v2594_v19, 1  ;;  %v2614_v25 = vld [vmem:[%s2525_s8 + $0x20] sm:$0xff]  ;;  %v2620_v27 = vld [vmem:[%s2525_s8 + $0x38] sm:$0xff] }
  0x18   : > { %v511_v5 = vsel %vm505_vm0, %v509_v3, %v510_v4  ;;  %v547_v6 = vsel %vm505_vm0, %v510_v4, 0.0  ;;  %s3454_s13 = smov (!%p2559_p10, %s2166_s13), 15  ;;  %v515_v26 = vrot.slane %v2614_v25, 1  ;;  %v519_v29 = vrot.slane %v2620_v27, 1  ;;  %v2632_v31 = vld [vmem:[%s2525_s8 + $0x30] sm:$0xff]  ;;  %v2638_v33 = vld [vmem:[%s2525_s8 + $0x48] sm:$0xff] }
  0x19   : > { %v2574_v11 = vld [vmem:[%s360_s7] sm:%s2395_s10]  ;;  %v2578_v12 = vld [vmem:[%s360_s7 + $0x8] sm:%s2395_s10]  ;;  %v548_v15 = vsel %vm505_vm0, %v513_v10, 0.0  ;;  %s3456_s13 = smov (!%p2559_p10, %s3454_s13), 15  ;;  %v514_v20 = vsel %vm505_vm0, %v512_v18, %v513_v10  ;;  %v549_v24 = vsel %vm505_vm0, %v516_v21, 0.0  ;;  %v518_v32 = vrot.slane %v2632_v31, 1 }
  0x1a   : > { %849 = vrot.lane.b32.xlu1 %v2534_v2, %s2446_s9  ;;  %902 = vrot.lane.b32.xlu0 %v511_v5, %s2447_s11  ;;  %v506_v13 = vrot.slane %v2574_v11, 1  ;;  %v507_v14 = vrot.slane %v2578_v12, 1  ;;  %s2079_s14 = sshll.u32 %s3456_s13, 1  ;;  %v517_v28 = vsel %vm505_vm0, %v515_v26, %v516_v21  ;;  %v550_v30 = vsel %vm505_vm0, %v519_v29, 0.0  ;;  %v2650_v37 = vld [vmem:[%s2525_s8 + $0x40] sm:$0xff]  ;;  %v2656_v39 = vld [vmem:[%s2525_s8 + $0x58] sm:$0xff] }
  0x1b   : > { %s375_s15 = sadd.s32 %s2079_s14, %s2519_s27  ;;  %v520_v34 = vsel %vm505_vm0, %v518_v32, %v519_v29  ;;  %v522_v35 = vrot.slane %v2638_v33, 1  ;;  %v521_v38 = vrot.slane %v2650_v37, 1  ;;  %v525_v42 = vrot.slane %v2656_v39, 1  ;;  %v2674_v44 = vld [vmem:[%s2525_s8 + $0x50] sm:$0xff]  ;;  %v2680_v46 = vld [vmem:[%s2525_s8 + $0x68] sm:$0xff]  ;;  %v2692_v50 = vld [vmem:[%s2525_s8 + $0x60] sm:$0xff] }
  0x1c   : > { %v508_v16 = vsel %vm505_vm0, %v506_v13, %v507_v14  ;;  %v546_v17 = vsel %vm505_vm0, %v507_v14, 0.0  ;;  %s2081_s16 = sshll.u32 %s375_s15, 3  ;;  %v524_v45 = vrot.slane %v2674_v44, 1  ;;  %v528_v48 = vrot.slane %v2680_v46, 1  ;;  %v2698_v52 = vld [vmem:[%s2525_s8 + $0x78] sm:$0xff]  ;;  %v2710_v56 = vld [vmem:[%s2525_s8 + $0x70] sm:$0xff] }
  0x1d   : > { %s377_s28 = scalar_lea.vmem %s3432_s2, %s2081_s16  ;;  %v551_v36 = vsel %vm505_vm0, %v522_v35, 0.0  ;;  %v523_v41 = vsel %vm505_vm0, %v521_v38, %v522_v35  ;;  %v552_v43 = vsel %vm505_vm0, %v525_v42, 0.0  ;;  %v527_v51 = vrot.slane %v2692_v50, 1  ;;  %s2082_s26 = sshll.u32 %s2428_s18, 4 }
  0x1e   : > { %904 = vrot.lane.b32.xlu1 %v547_v6, %s2447_s11  ;;  %797 = vrot.lane.b32.xlu0 %v511_v5, %s2448_s12  ;;  %s2401_s13 = scalar_select %p417_p11, 0, 255  ;;  %v526_v47 = vsel %vm505_vm0, %v524_v45, %v525_v42  ;;  %v553_v49 = vsel %vm505_vm0, %v528_v48, 0.0  ;;  %v531_v54 = vrot.slane %v2698_v52, 1  ;;  %v530_v57 = vrot.slane %v2710_v56, 1 }
  0x1f   : > { %v529_v53 = vsel %vm505_vm0, %v527_v51, %v528_v48  ;;  %v449_v58 = vrot.slane %v2531_v1, 7  ;;  %v450_v59 = vrot.slane %v2534_v2, 7  ;;  %v452_v7 = vrot.slane %v2528_v0, 7  ;;  %p385_p12 = scmp.lt.s32.totalorder %s2082_s26, 31 }
  0x20   : > { %v2605_v22 = vld [vmem:[%s377_s28] sm:%s2401_s13]  ;;  %v2607_v23 = vld [vmem:[%s377_s28 + $0x8] sm:%s2401_s13]  ;;  %v554_v55 = vsel %vm505_vm0, %v531_v54, 0.0  ;;  %v532_v60 = vsel %vm505_vm0, %v530_v57, %v531_v54  ;;  %v453_v14 = vrot.slane %v2557_v8, 7  ;;  %v455_v26 = vrot.slane %v2614_v25, 7  ;;  %s2084_s28 = sshll.u32 %s3448_s19, 6 }
  0x21   : > { %v2723_v61 = vsel %vm445_vm1, %v449_v58, %v450_v59  ;;  %v2738_v3 = vsel %vm445_vm1, 0.0, %v449_v58  ;;  %v533_v4 = vrot.slane %v2605_v22, 1  ;;  %v534_v5 = vrot.slane %v2607_v23, 1  ;;  %v2139_v57 = vld [vmem:[%s3433_s3 + $0x30] sm:$0xff]  ;;  %s3458_s26 = smov (!%p385_p12, %s2082_s26), 31 }
  0x22   : > { %799 = vrot.lane.b32.xlu1 %v547_v6, %s2448_s12  ;;  %793 = vrot.lane.b32.xlu0 %v508_v16, %s2448_s12  ;;  %v2755_v13 = vsel %vm445_vm1, 0.0, %v452_v7  ;;  %v2763_v16 = vsel %vm445_vm1, %v452_v7, %v453_v14  ;;  %v458_v54 = vrot.slane %v2632_v31, 7  ;;  %s2083_s18 = sshll.u32 %s3458_s26, 1 }
  0x23   : > { %v535_v6 = vsel %vm505_vm0, %v533_v4, %v534_v5  ;;  %s389_s13 = sadd.s32 %s2084_s28, %s2083_s18 }
  0x24   : > { %s2085_s27 = sshll.u32 %s389_s13, 3 }
  0x25   : > { %s3285_s19 = scalar_lea.vmem %s3435_s5, %s2085_s27 }
  0x26   : > { %853 = vrot.lane.b32.xlu1 %v2557_v8, %s2446_s9  ;;  %795 = vrot.lane.b32.xlu0 %v546_v17, %s2448_s12 }
  0x2a   : > { %908 = vrot.lane.b32.xlu1 %v548_v15, %s2447_s11  ;;  %906 = vrot.lane.b32.xlu0 %v514_v20, %s2447_s11 }
  0x2e   : > { %803 = vrot.lane.b32.xlu1 %v548_v15, %s2448_s12  ;;  %801 = vrot.lane.b32.xlu0 %v514_v20, %s2448_s12 }
  0x32   : > { %857 = vrot.lane.b32.xlu1 %v2594_v19, %s2446_s9  ;;  %855 = vrot.lane.b32.xlu0 %v2614_v25, %s2446_s9 }
  0x36   : > { %912 = vrot.lane.b32.xlu1 %v549_v24, %s2447_s11  ;;  %910 = vrot.lane.b32.xlu0 %v517_v28, %s2447_s11 }
  0x3a   : > { %807 = vrot.lane.b32.xlu1 %v549_v24, %s2448_s12  ;;  %805 = vrot.lane.b32.xlu0 %v517_v28, %s2448_s12  ;;  %v555_v24 = vsel %vm505_vm0, %v534_v5, 0.0  ;;  %v456_v28 = vrot.slane %v2594_v19, 7 }
  0x3e   : > { %861 = vrot.lane.b32.xlu1 %v2620_v27, %s2446_s9  ;;  %859 = vrot.lane.b32.xlu0 %v2632_v31, %s2446_s9 }
  0x42   : > { %916 = vrot.lane.b32.xlu1 %v550_v30, %s2447_s11  ;;  %914 = vrot.lane.b32.xlu0 %v520_v34, %s2447_s11 }
  0x46   : > { %811 = vrot.lane.b32.xlu1 %v550_v30, %s2448_s12  ;;  %809 = vrot.lane.b32.xlu0 %v520_v34, %s2448_s12  ;;  %v2780_v30 = vsel %vm445_vm1, %v455_v26, %v456_v28 }
  0x4a   : > { %865 = vrot.lane.b32.xlu1 %v2638_v33, %s2446_s9  ;;  %863 = vrot.lane.b32.xlu0 %v2650_v37, %s2446_s9 }
  0x4e   : > { %920 = vrot.lane.b32.xlu1 %v551_v36, %s2447_s11  ;;  %918 = vrot.lane.b32.xlu0 %v523_v41, %s2447_s11 }
  0x52   : > { %815 = vrot.lane.b32.xlu1 %v551_v36, %s2448_s12  ;;  %813 = vrot.lane.b32.xlu0 %v523_v41, %s2448_s12 }
  0x56   : > { %869 = vrot.lane.b32.xlu1 %v2656_v39, %s2446_s9  ;;  %867 = vrot.lane.b32.xlu0 %v2674_v44, %s2446_s9 }
  0x5a   : > { %924 = vrot.lane.b32.xlu1 %v552_v43, %s2447_s11  ;;  %922 = vrot.lane.b32.xlu0 %v526_v47, %s2447_s11 }
  0x5e   : > { %819 = vrot.lane.b32.xlu1 %v552_v43, %s2448_s12  ;;  %817 = vrot.lane.b32.xlu0 %v526_v47, %s2448_s12 }
  0x62   : > { %873 = vrot.lane.b32.xlu1 %v2680_v46, %s2446_s9  ;;  %871 = vrot.lane.b32.xlu0 %v2692_v50, %s2446_s9 }
  0x66   : > { %928 = vrot.lane.b32.xlu1 %v553_v49, %s2447_s11  ;;  %926 = vrot.lane.b32.xlu0 %v529_v53, %s2447_s11 }
  0x6a   : > { %823 = vrot.lane.b32.xlu1 %v553_v49, %s2448_s12  ;;  %821 = vrot.lane.b32.xlu0 %v529_v53, %s2448_s12  ;;  %v2802_v49 = vsel %vm445_vm1, 0.0, %v455_v26 }
  0x6e   : > { %877 = vrot.lane.b32.xlu1 %v2698_v52, %s2446_s9  ;;  %875 = vrot.lane.b32.xlu0 %v2710_v56, %s2446_s9 }
  0x72   : > { %932 = vrot.lane.b32.xlu1 %v554_v55, %s2447_s11  ;;  %930 = vrot.lane.b32.xlu0 %v532_v60, %s2447_s11 }
  0x76   : > { %558 = vrot.lane.b32.xlu1 %v2578_v12, %s2448_s12  ;;  %556 = vrot.lane.b32.xlu0 %v2574_v11, %s2448_s12 }
  0x7a   : > { %621 = vrot.lane.b32.xlu1 %v2723_v61, %s2446_s9  ;;  %619 = vrot.lane.b32.xlu0 %v2738_v3, %s2446_s9 }
  0x7e   : > { %825 = vrot.lane.b32.xlu1 %v532_v60, %s2448_s12  ;;  %673 = vrot.lane.b32.xlu0 %v2531_v1, %s2447_s11 }
  0x82   : > { %827 = vrot.lane.b32.xlu1 %v554_v55, %s2448_s12  ;;  %675 = vrot.lane.b32.xlu0 %v2534_v2, %s2447_s11  ;;  %v459_v55 = vrot.slane %v2620_v27, 7 }
  0x84   : > { %v2830_v63 = vsel %vm445_vm1, %v458_v54, %v459_v55 }
  0x86   : > { %560 = vrot.lane.b32.xlu1 %v2531_v1, %s2448_s12  ;;  %879 = vrot.lane.b32.xlu0 %v2605_v22, %s2446_s9 }
  0x88   : > { %v848_v9 = vpop.permute.xlu1 %847  ;;  %v852_v10 = vpop.permute.xlu0 %851 }
  0x8a   : > { %934 = vrot.lane.b32.xlu1 %v535_v6, %s2447_s11  ;;  %881 = vrot.lane.b32.xlu0 %v2607_v23, %s2446_s9 }
  0x8c   : > { %v850_v15 = vpop.permute.xlu1 %849  ;;  %v903_v17 = vpop.permute.xlu0 %902 }
  0x8e   : > { %623 = vrot.lane.b32.xlu1 %v2755_v13, %s2446_s9  ;;  %562 = vrot.lane.b32.xlu0 %v2534_v2, %s2448_s12 }
  0x90   : > { %v905_v18 = vpop.permute.xlu1 %904  ;;  %v798_v21 = vpop.permute.xlu0 %797 }
  0x91   : > { %v958_v43 = vsel %vm727_vm2, %v2531_v1, %v798_v21 }
  0x92   : > { %625 = vrot.lane.b32.xlu1 %v2763_v16, %s2446_s9  ;;  %936 = vrot.lane.b32.xlu0 %v555_v24, %s2447_s11  ;;  %v976_v1 = vsel %vm746_vm4, %v958_v43, %v852_v10  ;;  %v2844_v10 = vsel %vm445_vm1, 0.0, %v458_v54  ;;  %v464_v43 = vrot.slane %v2674_v44, 7  ;;  %v2911_v54 = vld [vmem:[%s3433_s3 + $0x28] sm:$0xff] }
  0x93   : > { %2295 = vmatprep.subr.mxu0 %v2911_v54 }
  0x94   : > { %v800_v20 = vpop.permute.xlu1 %799  ;;  %v794_v32 = vpop.permute.xlu0 %793 }
  0x95   : > { %v956_v35 = vsel %vm727_vm2, %v2574_v11, %v794_v32  ;;  %v959_v58 = vsel %vm727_vm2, %v2534_v2, %v800_v20  ;;  %v462_v20 = vrot.slane %v2638_v33, 7 }
  0x96   : > { %679 = vrot.lane.b32.xlu1 %v2557_v8, %s2447_s11  ;;  %677 = vrot.lane.b32.xlu0 %v2528_v0, %s2447_s11  ;;  %v974_v36 = vsel %vm746_vm4, %v956_v35, %v848_v9 }
  0x97   : > { %v992_v38 = vsel %vm765_vm3, %v974_v36, %v903_v17 }
  0x98   : > { %v854_v29 = vpop.permute.xlu1 %853  ;;  %2271 = vmatprep.mubr.msk.f32.mxu1 %vm1019_vm5, %v992_v38  ;;  %v796_v41 = vpop.permute.xlu0 %795 }
  0x99   : > { %v957_v45 = vsel %vm727_vm2, %v2578_v12, %v796_v41  ;;  %v977_v60 = vsel %vm746_vm4, %v959_v58, %v854_v29 }
  0x9a   : > { %566 = vrot.lane.b32.xlu1 %v2557_v8, %s2448_s12  ;;  %v975_v47 = vsel %vm746_vm4, %v957_v45, %v850_v15  ;;  %564 = vrot.lane.b32.xlu0 %v2528_v0, %s2448_s12  ;;  %v465_v45 = vrot.slane %v2656_v39, 7 }
  0x9b   : > { %v993_v48 = vsel %vm765_vm3, %v975_v47, %v905_v18  ;;  %v461_v18 = vrot.slane %v2650_v37, 7 }
  0x9c   : > { %v909_v34 = vpop.permute.xlu1 %908  ;;  %2272 = vmatmul.mubr.msk.f32.vlgmr.msra.gmra.mxu1 %vm1019_vm5, %v993_v48  ;;  %v907_v51 = vpop.permute.xlu0 %906 }
  0x9d   : > { %v2814_v59 = vsel %vm765_vm3, %v976_v1, %v907_v51  ;;  %2324 = vmatpush3.msra.mxu1 %v2661_v40  ;;  %v2823_v62 = vsel %vm765_vm3, %v977_v60, %v909_v34  ;;  %v2866_v26 = vsel %vm445_vm1, %v461_v18, %v462_v20  ;;  %v2880_v36 = vsel %vm445_vm1, 0.0, %v461_v18 }
  0x9e   : > { %629 = vrot.lane.b32.xlu1 %v2780_v30, %s2446_s9  ;;  %2274 = vmatprep.mubr.msk.f32.mxu1 %vm1019_vm5, %v2814_v59  ;;  %v2902_v1 = vsel %vm445_vm1, %v464_v43, %v465_v45  ;;  %v2922_v60 = vsel %vm445_vm1, 0.0, %v464_v43 }
  0x9f   : > { %627 = vrot.lane.b32.xlu0 %v2802_v49, %s2446_s9  ;;  %2325 = vmatprep.subr.mxu1 %v2139_v57 }
  0xa0   : > { %v804_v42 = vpop.permute.xlu1 %803  ;;  %2275 = vmatmul.mubr.msk.f32.gmra.mxu1 %vm1019_vm5, %v2823_v62  ;;  %v802_v2 = vpop.permute.xlu0 %801 }
  0xa1   : > { %2326 = vmatpush3.msra.mxu1 %v2139_v57  ;;  %v961_v6 = vsel %vm727_vm2, %v2557_v8, %v804_v42  ;;  %v960_v7 = vsel %vm727_vm2, %v2528_v0, %v802_v2 }
  0xa2   : > { %683 = vrot.lane.b32.xlu1 %v2594_v19, %s2447_s11 }
  0xa3   : > { %681 = vrot.lane.b32.xlu0 %v2614_v25, %s2447_s11 }
  0xa4   : > { %v858_v53 = vpop.permute.xlu1 %857  ;;  %v856_v4 = vpop.permute.xlu0 %855 }
  0xa5   : > { %v979_v9 = vsel %vm746_vm4, %v961_v6, %v858_v53  ;;  %v978_v14 = vsel %vm746_vm4, %v960_v7, %v856_v4  ;;  %v468_v6 = vrot.slane %v2680_v46, 7 }
  0xa6   : > { %570 = vrot.lane.b32.xlu1 %v2594_v19, %s2448_s12 }
  0xa7   : > { %568 = vrot.lane.b32.xlu0 %v2614_v25, %s2448_s12 }
  0xa8   : > { %v913_v40 = vpop.permute.xlu1 %912  ;;  %v911_v8 = vpop.permute.xlu0 %910 }
  0xa9   : > { %v2850_v15 = vsel %vm765_vm3, %v979_v9, %v913_v40  ;;  %v2855_v0 = vsel %vm765_vm3, %v978_v14, %v911_v8 }
  0xaa   : > { %633 = vrot.lane.b32.xlu1 %v2830_v63, %s2446_s9  ;;  %2277 = vmatprep.mubr.msk.f32.mxu1 %vm1019_vm5, %v2855_v0 }
  0xab   : > { %631 = vrot.lane.b32.xlu0 %v2844_v10, %s2446_s9  ;;  %2278 = vmatmul.mubr.msk.f32.gmra.mxu1 %vm1019_vm5, %v2850_v15 }
  0xac   : > { %v808_v5 = vpop.permute.xlu1 %807  ;;  %v806_v21 = vpop.permute.xlu0 %805 }
  0xad   : > { %v963_v32 = vsel %vm727_vm2, %v2594_v19, %v808_v5  ;;  %v962_v34 = vsel %vm727_vm2, %v2614_v25, %v806_v21  ;;  %v467_v5 = vrot.slane %v2692_v50, 7 }
  0xae   : > { %687 = vrot.lane.b32.xlu1 %v2620_v27, %s2447_s11 }
  0xaf   : > { %685 = vrot.lane.b32.xlu0 %v2632_v31, %s2447_s11  ;;  %v2944_v14 = vsel %vm445_vm1, %v467_v5, %v468_v6 }
  0xb0   : > { %v862_v17 = vpop.permute.xlu1 %861  ;;  %v860_v28 = vpop.permute.xlu0 %859 }
  0xb1   : > { %v981_v35 = vsel %vm746_vm4, %v963_v32, %v862_v17  ;;  %v980_v38 = vsel %vm746_vm4, %v962_v34, %v860_v28  ;;  %v470_v34 = vrot.slane %v2710_v56, 7 }
  0xb2   : > { %574 = vrot.lane.b32.xlu1 %v2620_v27, %s2448_s12 }
  0xb3   : > { %572 = vrot.lane.b32.xlu0 %v2632_v31, %s2448_s12 }
  0xb4   : > { %v917_v24 = vpop.permute.xlu1 %916  ;;  %v915_v19 = vpop.permute.xlu0 %914 }
  0xb5   : > { %v2886_v41 = vsel %vm765_vm3, %v981_v35, %v917_v24  ;;  %v2891_v25 = vsel %vm765_vm3, %v980_v38, %v915_v19  ;;  %v2958_v24 = vsel %vm445_vm1, 0.0, %v467_v5  ;;  %v471_v35 = vrot.slane %v2698_v52, 7 }
  0xb6   : > { %637 = vrot.lane.b32.xlu1 %v2866_v26, %s2446_s9  ;;  %2280 = vmatprep.mubr.msk.f32.mxu1 %vm1019_vm5, %v2891_v25 }
  0xb7   : > { %635 = vrot.lane.b32.xlu0 %v2880_v36, %s2446_s9  ;;  %2281 = vmatmul.mubr.msk.f32.gmra.mxu1 %vm1019_vm5, %v2886_v41 }
  0xb8   : > { %v812_v29 = vpop.permute.xlu1 %811  ;;  %v810_v47 = vpop.permute.xlu0 %809 }
  0xb9   : > { %v965_v55 = vsel %vm727_vm2, %v2620_v27, %v812_v29  ;;  %v964_v57 = vsel %vm727_vm2, %v2632_v31, %v810_v47 }
  0xba   : > { %691 = vrot.lane.b32.xlu1 %v2638_v33, %s2447_s11 }
  0xbb   : > { %689 = vrot.lane.b32.xlu0 %v2650_v37, %s2447_s11 }
  0xbc   : > { %v866_v42 = vpop.permute.xlu1 %865  ;;  %v864_v51 = vpop.permute.xlu0 %863 }
  0xbd   : > { %v983_v58 = vsel %vm746_vm4, %v965_v55, %v866_v42  ;;  %v982_v2 = vsel %vm746_vm4, %v964_v57, %v864_v51  ;;  %v2980_v42 = vsel %vm445_vm1, %v470_v34, %v471_v35  ;;  %v474_v55 = vrot.slane %v2607_v23, 7 }
  0xbe   : > { %578 = vrot.lane.b32.xlu1 %v2638_v33, %s2448_s12  ;;  %v447_v35 = vrot.slane %v2578_v12, 7 }
  0xbf   : > { %576 = vrot.lane.b32.xlu0 %v2650_v37, %s2448_s12 }
  0xc0   : > { %v921_v48 = vpop.permute.xlu1 %920  ;;  %v919_v40 = vpop.permute.xlu0 %918 }
  0xc1   : > { %v2928_v27 = vsel %vm765_vm3, %v983_v58, %v921_v48  ;;  %v2933_v31 = vsel %vm765_vm3, %v982_v2, %v919_v40  ;;  %v473_v40 = vrot.slane %v2605_v22, 7 }
  0xc2   : > { %641 = vrot.lane.b32.xlu1 %v2902_v1, %s2446_s9  ;;  %2283 = vmatprep.mubr.msk.f32.mxu1 %vm1019_vm5, %v2933_v31 }
  0xc3   : > { %639 = vrot.lane.b32.xlu0 %v2922_v60, %s2446_s9  ;;  %2284 = vmatmul.mubr.msk.f32.gmra.mxu1 %vm1019_vm5, %v2928_v27  ;;  %v475_v6 = vsel %vm445_vm1, %v473_v40, %v474_v55 }
  0xc4   : > { %v816_v53 = vpop.permute.xlu1 %815  ;;  %v814_v7 = vpop.permute.xlu0 %813 }
  0xc5   : > { %v967_v18 = vsel %vm727_vm2, %v2638_v33, %v816_v53  ;;  %v966_v20 = vsel %vm727_vm2, %v2650_v37, %v814_v7  ;;  %v2994_v53 = vsel %vm445_vm1, 0.0, %v470_v34 }
  0xc6   : > { %695 = vrot.lane.b32.xlu1 %v2656_v39, %s2447_s11 }
  0xc7   : > { %693 = vrot.lane.b32.xlu0 %v2674_v44, %s2447_s11 }
  0xc8   : > { %v870_v4 = vpop.permute.xlu1 %869  ;;  %v868_v8 = vpop.permute.xlu0 %867 }
  0xc9   : > { %v985_v21 = vsel %vm746_vm4, %v967_v18, %v870_v4  ;;  %v984_v28 = vsel %vm746_vm4, %v966_v20, %v868_v8  ;;  %v504_v20 = vsel %vm445_vm1, 0.0, %v473_v40 }
  0xca   : > { %582 = vrot.lane.b32.xlu1 %v2656_v39, %s2448_s12 }
  0xcb   : > { %580 = vrot.lane.b32.xlu0 %v2674_v44, %s2448_s12 }
  0xcc   : > { %v925_v9 = vpop.permute.xlu1 %924  ;;  %v923_v33 = vpop.permute.xlu0 %922 }
  0xcd   : > { %v2964_v29 = vsel %vm765_vm3, %v985_v21, %v925_v9  ;;  %v2969_v37 = vsel %vm765_vm3, %v984_v28, %v923_v33 }
  0xce   : > { %645 = vrot.lane.b32.xlu1 %v2944_v14, %s2446_s9  ;;  %2286 = vmatprep.mubr.msk.f32.mxu1 %vm1019_vm5, %v2969_v37 }
  0xcf   : > { %643 = vrot.lane.b32.xlu0 %v2958_v24, %s2446_s9  ;;  %2287 = vmatmul.mubr.msk.f32.gmra.mxu1 %vm1019_vm5, %v2964_v29 }
  0xd0   : > { %v820_v17 = vpop.permute.xlu1 %819  ;;  %v818_v38 = vpop.permute.xlu0 %817 }
  0xd1   : > { %v969_v47 = vsel %vm727_vm2, %v2656_v39, %v820_v17  ;;  %v968_v48 = vsel %vm727_vm2, %v2674_v44, %v818_v38 }
  0xd2   : > { %699 = vrot.lane.b32.xlu1 %v2680_v46, %s2447_s11 }
  0xd3   : > { %697 = vrot.lane.b32.xlu0 %v2692_v50, %s2447_s11 }
  0xd4   : > { %v874_v32 = vpop.permute.xlu1 %873  ;;  %v872_v43 = vpop.permute.xlu0 %871 }
  0xd5   : > { %v987_v51 = vsel %vm746_vm4, %v969_v47, %v874_v32  ;;  %v986_v57 = vsel %vm746_vm4, %v968_v48, %v872_v43 }
  0xd6   : > { %586 = vrot.lane.b32.xlu1 %v2680_v46, %s2448_s12 }
  0xd7   : > { %584 = vrot.lane.b32.xlu0 %v2692_v50, %s2448_s12 }
  0xd8   : > { %v929_v19 = vpop.permute.xlu1 %928  ;;  %v927_v58 = vpop.permute.xlu0 %926 }
  0xd9   : > { %v3001_v39 = vsel %vm765_vm3, %v987_v51, %v929_v19  ;;  %v3005_v44 = vsel %vm765_vm3, %v986_v57, %v927_v58  ;;  %v2121_v51 = vld [vmem:[%s3433_s3 + $0x20] sm:$0xff] }
  0xda   : > { %649 = vrot.lane.b32.xlu1 %v2980_v42, %s2446_s9  ;;  %2289 = vmatprep.mubr.msk.f32.mxu1 %vm1019_vm5, %v3005_v44 }
  0xdb   : > { %647 = vrot.lane.b32.xlu0 %v2994_v53, %s2446_s9  ;;  %2290 = vmatmul.mubr.msk.f32.gmra.mxu1 %vm1019_vm5, %v3001_v39 }
  0xdc   : > { %v824_v45 = vpop.permute.xlu1 %823  ;;  %v822_v4 = vpop.permute.xlu0 %821 }
  0xdd   : > { %v971_v8 = vsel %vm727_vm2, %v2680_v46, %v824_v45  ;;  %v970_v17 = vsel %vm727_vm2, %v2692_v50, %v822_v4  ;;  %v446_v50 = vrot.slane %v2574_v11, 7 }
  0xde   : > { %703 = vrot.lane.b32.xlu1 %v2698_v52, %s2447_s11 }
  0xdf   : > { %701 = vrot.lane.b32.xlu0 %v2710_v56, %s2447_s11  ;;  %v495_v38 = vsel %vm445_vm1, 0.0, %v446_v50  ;;  %v448_v43 = vsel %vm445_vm1, %v446_v50, %v447_v35 }
  0xe0   : > { %v878_v2 = vpop.permute.xlu1 %877  ;;  %v876_v7 = vpop.permute.xlu0 %875 }
  0xe1   : > { %v989_v18 = vsel %vm746_vm4, %v971_v8, %v878_v2  ;;  %v988_v21 = vsel %vm746_vm4, %v970_v17, %v876_v7 }
  0xe2   : > { %590 = vrot.lane.b32.xlu1 %v2698_v52, %s2448_s12 }
  0xe3   : > { %588 = vrot.lane.b32.xlu0 %v2710_v56, %s2448_s12 }
  0xe4   : > { %v933_v5 = vpop.permute.xlu1 %932  ;;  %v931_v33 = vpop.permute.xlu0 %930 }
  0xe5   : > { %v1007_v28 = vsel %vm765_vm3, %v989_v18, %v933_v5  ;;  %v1006_v46 = vsel %vm765_vm3, %v988_v21, %v931_v33 }
  0xe6   : > { %653 = vrot.lane.b32.xlu1 %v475_v6, %s2446_s9  ;;  %2292 = vmatprep.mubr.msk.f32.mxu1 %vm1019_vm5, %v1006_v46 }
  0xe7   : > { %651 = vrot.lane.b32.xlu0 %v504_v20, %s2446_s9  ;;  %2293 = vmatmul.mubr.msk.f32.gmra.mxu1 %vm1019_vm5, %v1007_v28 }
  0xe8   : > { %v559_v9 = vpop.permute.xlu1 %558  ;;  %2327 = vmatprep.mubr.msk.f32.mxu1 %vm1019_vm5, %v2814_v59 }
  0xe9   : > { %v729_v45 = vsel %vm727_vm2, %v448_v43, %v559_v9 }
  0xea   : > { %707 = vrot.lane.b32.xlu1 %v2607_v23, %s2447_s11  ;;  %v557_v23 = vpop.permute.xlu0 %556 }
  0xeb   : > { %705 = vrot.lane.b32.xlu0 %v2605_v22, %s2447_s11  ;;  %2328 = vmatmul.mubr.msk.f32.vlgmr.msra.gmra.mxu1 %vm1019_vm5, %v2823_v62  ;;  %v728_v59 = vsel %vm727_vm2, %v495_v38, %v557_v23 }
  0xec   : > { %v622_v32 = vpop.permute.xlu1 %621  ;;  %2330 = vmatprep.mubr.msk.f32.mxu1 %vm1019_vm5, %v2855_v0 }
  0xed   : > { %v748_v47 = vsel %vm746_vm4, %v729_v45, %v622_v32 }
  0xee   : > { %v620_v19 = vpop.permute.xlu0 %619 }
  0xef   : > { %2331 = vmatmul.mubr.msk.f32.gmra.mxu1 %vm1019_vm5, %v2850_v15  ;;  %v747_v12 = vsel %vm746_vm4, %v728_v59, %v620_v19 }
  0xf0   : > { %v826_v34 = vpop.permute.xlu1 %825  ;;  %2333 = vmatprep.mubr.msk.f32.mxu1 %vm1019_vm5, %v2891_v25 }
  0xf2   : > { %v674_v22 = vpop.permute.xlu0 %673 }
  0xf3   : > { %v766_v0 = vsel %vm765_vm3, %v747_v12, %v674_v22  ;;  %2334 = vmatmul.mubr.msk.f32.gmra.mxu1 %vm1019_vm5, %v2886_v41 }
  0xf4   : > { %v828_v11 = vpop.permute.xlu1 %827  ;;  %2243 = vmatprep.mubr.msk.f32.mxu0 %vm1019_vm5, %v766_v0  ;;  %2336 = vmatprep.mubr.msk.f32.mxu1 %vm1019_vm5, %v2933_v31 }
  0xf5   : > { %v973_v58 = vsel %vm727_vm2, %v2698_v52, %v828_v11 }
  0xf6   : > { %v676_v15 = vpop.permute.xlu0 %675 }
  0xf7   : > { %v767_v25 = vsel %vm765_vm3, %v748_v47, %v676_v15  ;;  %2337 = vmatmul.mubr.msk.f32.gmra.mxu1 %vm1019_vm5, %v2928_v27  ;;  %v972_v27 = vsel %vm727_vm2, %v2710_v56, %v826_v34 }
  0xf8   : > { %v561_v62 = vpop.permute.xlu1 %560  ;;  %2244 = vmatmul.mubr.msk.f32.vlgmr.msra.gmra.mxu0 %vm1019_vm5, %v767_v25  ;;  %2339 = vmatprep.mubr.msk.f32.mxu1 %vm1019_vm5, %v2969_v37 }
  0xf9   : > { %2296 = vmatpush3.msra.mxu0 %v2911_v54 }
  0xfa   : > { %v880_v41 = vpop.permute.xlu0 %879  ;;  %2297 = vmatprep.subr.mxu0 %v2121_v51 }
  0xfb   : > { %2298 = vmatpush3.msra.mxu0 %v2121_v51  ;;  %2340 = vmatmul.mubr.msk.f32.gmra.mxu1 %vm1019_vm5, %v2964_v29  ;;  %v990_v29 = vsel %vm746_vm4, %v972_v27, %v880_v41 }
  0xfc   : > { %v935_v48 = vpop.permute.xlu1 %934  ;;  %2342 = vmatprep.mubr.msk.f32.mxu1 %vm1019_vm5, %v3005_v44 }
  0xfd   : > { %v1008_v2 = vsel %vm765_vm3, %v990_v29, %v935_v48 }
  0xfe   : > { %v882_v55 = vpop.permute.xlu0 %881 }
  0xff   : > { %2343 = vmatmul.mubr.msk.f32.gmra.mxu1 %vm1019_vm5, %v3001_v39  ;;  %v991_v40 = vsel %vm746_vm4, %v973_v58, %v882_v55  ;;  %v730_v39 = vsel %vm727_vm2, %v2738_v3, %v561_v62 }
 0x100   : > { %v624_v31 = vpop.permute.xlu1 %623  ;;  %2345 = vmatprep.mubr.msk.f32.mxu1 %vm1019_vm5, %v1006_v46 }
 0x101   : > { %v749_v6 = vsel %vm746_vm4, %v730_v39, %v624_v31 }
 0x102   : > { %v563_v54 = vpop.permute.xlu0 %562 }
 0x103   : > { %2346 = vmatmul.mubr.msk.f32.gmra.mxu1 %vm1019_vm5, %v1007_v28  ;;  %v731_v52 = vsel %vm727_vm2, %v2723_v61, %v563_v54 }
 0x104   : > { %v626_v57 = vpop.permute.xlu1 %625  ;;  %2348 = vmatprep.mubr.msk.f32.mxu1 %vm1019_vm5, %v1008_v2 }
 0x105   : > { %v750_v5 = vsel %vm746_vm4, %v731_v52, %v626_v57 }
 0x106   : > { %v937_v44 = vpop.permute.xlu0 %936 }
 0x107   : > { %v1009_v4 = vsel %vm765_vm3, %v991_v40, %v937_v44 }
 0x108   : > { %v680_v37 = vpop.permute.xlu1 %679  ;;  %2349 = vmatmul.mubr.msk.f32.gmra.mxu1 %vm1019_vm5, %v1009_v4 }
 0x109   : > { %v3096_v9 = vsel %vm765_vm3, %v750_v5, %v680_v37 }
 0x10a   : > { %v678_v7 = vpop.permute.xlu0 %677 }
 0x10b   : > { %v3099_v17 = vsel %vm765_vm3, %v749_v6, %v678_v7 }
 0x10c   : > { %v567_v56 = vpop.permute.xlu1 %566  ;;  %2246 = vmatprep.mubr.msk.f32.mxu0 %vm1019_vm5, %v3099_v17 }
 0x10d   : > { %2247 = vmatmul.mubr.msk.f32.gmra.mxu0 %vm1019_vm5, %v3096_v9  ;;  %v733_v18 = vsel %vm727_vm2, %v2763_v16, %v567_v56 }
 0x10e   : > { %v565_v61 = vpop.permute.xlu0 %564 }
 0x10f   : > { %v732_v20 = vsel %vm727_vm2, %v2755_v13, %v565_v61 }
 0x110   : > { %v630_v8 = vpop.permute.xlu1 %629 }
 0x111   : > { %v752_v28 = vsel %vm746_vm4, %v733_v18, %v630_v8 }
 0x112   : > { %v628_v21 = vpop.permute.xlu0 %627 }
 0x113   : > { %v751_v32 = vsel %vm746_vm4, %v732_v20, %v628_v21 }
 0x114   : > { %v684_v3 = vpop.permute.xlu1 %683 }
 0x115   : > { %v3112_v50 = vsel %vm765_vm3, %v752_v28, %v684_v3 }
 0x116   : > { %v682_v46 = vpop.permute.xlu0 %681 }
 0x117   : > { %v3115_v23 = vsel %vm765_vm3, %v751_v32, %v682_v46 }
 0x118   : > { %v571_v33 = vpop.permute.xlu1 %570  ;;  %2249 = vmatprep.mubr.msk.f32.mxu0 %vm1019_vm5, %v3115_v23 }
 0x119   : > { %2250 = vmatmul.mubr.msk.f32.gmra.mxu0 %vm1019_vm5, %v3112_v50  ;;  %v735_v35 = vsel %vm727_vm2, %v2780_v30, %v571_v33 }
 0x11a   : > { %v569_v13 = vpop.permute.xlu0 %568 }
 0x11b   : > { %v734_v38 = vsel %vm727_vm2, %v2802_v49, %v569_v13 }
 0x11c   : > { %v634_v34 = vpop.permute.xlu1 %633 }
 0x11d   : > { %v754_v11 = vsel %vm746_vm4, %v735_v35, %v634_v34 }
 0x11e   : > { %v632_v19 = vpop.permute.xlu0 %631 }
 0x11f   : > { %v753_v59 = vsel %vm746_vm4, %v734_v38, %v632_v19 }
 0x120   : > { %v688_v16 = vpop.permute.xlu1 %687 }
 0x121   : > { %v3128_v22 = vsel %vm765_vm3, %v754_v11, %v688_v16 }
 0x122   : > { %v686_v12 = vpop.permute.xlu0 %685 }
 0x123   : > { %v3131_v62 = vsel %vm765_vm3, %v753_v59, %v686_v12 }
 0x124   : > { %v575_v43 = vpop.permute.xlu1 %574  ;;  %2252 = vmatprep.mubr.msk.f32.mxu0 %vm1019_vm5, %v3131_v62 }
 0x125   : > { %2253 = vmatmul.mubr.msk.f32.gmra.mxu0 %vm1019_vm5, %v3128_v22  ;;  %v737_v0 = vsel %vm727_vm2, %v2830_v63, %v575_v43 }
 0x126   : > { %v573_v30 = vpop.permute.xlu0 %572 }
 0x127   : > { %v736_v47 = vsel %vm727_vm2, %v2844_v10, %v573_v30 }
 0x128   : > { %v638_v45 = vpop.permute.xlu1 %637 }
 0x129   : > { %v756_v48 = vsel %vm746_vm4, %v737_v0, %v638_v45 }
 0x12a   : > { %v636_v15 = vpop.permute.xlu0 %635 }
 0x12b   : > { %v755_v51 = vsel %vm746_vm4, %v736_v47, %v636_v15 }
 0x12c   : > { %v692_v49 = vpop.permute.xlu1 %691 }
 0x12d   : > { %v3144_v31 = vsel %vm765_vm3, %v756_v48, %v692_v49 }
 0x12e   : > { %v690_v41 = vpop.permute.xlu0 %689 }
 0x12f   : > { %v774_v55 = vsel %vm765_vm3, %v755_v51, %v690_v41 }
 0x130   : > { %v579_v25 = vpop.permute.xlu1 %578  ;;  %2255 = vmatprep.mubr.msk.f32.mxu0 %vm1019_vm5, %v774_v55 }
 0x131   : > { %2256 = vmatmul.mubr.msk.f32.gmra.mxu0 %vm1019_vm5, %v3144_v31  ;;  %v739_v27 = vsel %vm727_vm2, %v2866_v26, %v579_v25 }
 0x132   : > { %v577_v63 = vpop.permute.xlu0 %576 }
 0x133   : > { %v738_v54 = vsel %vm727_vm2, %v2880_v36, %v577_v63 }
 0x134   : > { %v642_v57 = vpop.permute.xlu1 %641 }
 0x135   : > { %v758_v58 = vsel %vm746_vm4, %v739_v27, %v642_v57 }
 0x136   : > { %v640_v37 = vpop.permute.xlu0 %639 }
 0x137   : > { %v757_v2 = vsel %vm746_vm4, %v738_v54, %v640_v37 }
 0x138   : > { %v696_v10 = vpop.permute.xlu1 %695 }
 0x139   : > { %v777_v44 = vsel %vm765_vm3, %v758_v58, %v696_v10 }
 0x13a   : > { %v694_v40 = vpop.permute.xlu0 %693 }
 0x13b   : > { %v776_v56 = vsel %vm765_vm3, %v757_v2, %v694_v40 }
 0x13c   : > { %v583_v29 = vpop.permute.xlu1 %582  ;;  %2258 = vmatprep.mubr.msk.f32.mxu0 %vm1019_vm5, %v776_v56 }
 0x13d   : > { %2259 = vmatmul.mubr.msk.f32.gmra.mxu0 %vm1019_vm5, %v777_v44  ;;  %v741_v36 = vsel %vm727_vm2, %v2902_v1, %v583_v29 }
 0x13e   : > { %v581_v26 = vpop.permute.xlu0 %580 }
 0x13f   : > { %v740_v52 = vsel %vm727_vm2, %v2922_v60, %v581_v26 }
 0x140   : > { %v646_v39 = vpop.permute.xlu1 %645 }
 0x141   : > { %v760_v6 = vsel %vm746_vm4, %v741_v36, %v646_v39 }
 0x142   : > { %v644_v5 = vpop.permute.xlu0 %643 }
 0x143   : > { %v759_v8 = vsel %vm746_vm4, %v740_v52, %v644_v5 }
 0x144   : > { %v700_v4 = vpop.permute.xlu1 %699 }
 0x145   : > { %v779_v3 = vsel %vm765_vm3, %v760_v6, %v700_v4 }
 0x146   : > { %v698_v61 = vpop.permute.xlu0 %697 }
 0x147   : > { %v778_v18 = vsel %vm765_vm3, %v759_v8, %v698_v61 }
 0x148   : > { %v587_v7 = vpop.permute.xlu1 %586  ;;  %2261 = vmatprep.mubr.msk.f32.mxu0 %vm1019_vm5, %v778_v18 }
 0x149   : > { %2262 = vmatmul.mubr.msk.f32.gmra.mxu0 %vm1019_vm5, %v779_v3  ;;  %v743_v60 = vsel %vm727_vm2, %v2944_v14, %v587_v7  ;;  %v3189_v14 = vld [vmem:[%s3434_s4] ss:$0 sm:$0xff] }
 0x14a   : > { %v585_v1 = vpop.permute.xlu0 %584 }
 0x14b   : > { %v742_v21 = vsel %vm727_vm2, %v2958_v24, %v585_v1 }
 0x14c   : > { %v650_v20 = vpop.permute.xlu1 %649 }
 0x14d   : > { %v762_v33 = vsel %vm746_vm4, %v743_v60, %v650_v20 }
 0x14e   : > { %v648_v28 = vpop.permute.xlu0 %647 }
 0x14f   : > { %v761_v46 = vsel %vm746_vm4, %v742_v21, %v648_v28 }
 0x150   : > { %v704_v32 = vpop.permute.xlu1 %703 }
 0x151   : > { %v781_v13 = vsel %vm765_vm3, %v762_v33, %v704_v32 }
 0x152   : > { %v702_v34 = vpop.permute.xlu0 %701 }
 0x153   : > { %v780_v16 = vsel %vm765_vm3, %v761_v46, %v702_v34 }
 0x154   : > { %2264 = vmatprep.mubr.msk.f32.mxu0 %vm1019_vm5, %v780_v16  ;;  %v591_v19 = vpop.permute.xlu1 %590 }
 0x155   : > { %2265 = vmatmul.mubr.msk.f32.gmra.mxu0 %vm1019_vm5, %v781_v13 }
 0x156   : > { %2299 = vmatprep.mubr.msk.f32.mxu0 %vm1019_vm5, %v3099_v17  ;;  %v589_v38 = vpop.permute.xlu0 %588 }
 0x157   : > { %v744_v12 = vsel %vm727_vm2, %v2994_v53, %v589_v38 }
 0x159   : > { %2300 = vmatmul.mubr.msk.f32.vlgmr.msra.gmra.mxu0 %vm1019_vm5, %v3096_v9 }
 0x15a   : > { %2302 = vmatprep.mubr.msk.f32.mxu0 %vm1019_vm5, %v3115_v23  ;;  %v652_v59 = vpop.permute.xlu0 %651 }
 0x15b   : > { %v763_v45 = vsel %vm746_vm4, %v744_v12, %v652_v59 }
 0x15c   : > { %v2273_v24 = vpop.f32.mrf.mxu1 }
 0x15d   : > { %2303 = vmatmul.mubr.msk.f32.gmra.mxu0 %vm1019_vm5, %v3112_v50  ;;  %v1336_v17 = vadd.f32 %v2273_v24, %v3189_v14 }
 0x15e   : > { %2305 = vmatprep.mubr.msk.f32.mxu0 %vm1019_vm5, %v3131_v62  ;;  %v1330_v35 = vpop.f32.mrf.mxu1  ;;  %v745_v62 = vsel %vm727_vm2, %v2980_v42, %v591_v19  ;;  %v706_v30 = vpop.permute.xlu0 %705 }
 0x15f   : > { %v1331_v9 = vadd.f32 %v3189_v14, %v1330_v35  ;;  %1427 = vrot.lane.b32.xlu1 %v1336_v17, %s2448_s12  ;;  %v782_v53 = vsel %vm765_vm3, %v763_v45, %v706_v30 }
 0x160   : > { %v2276_v23 = vpop.f32.mrf.mxu1 }
 0x161   : > { %2306 = vmatmul.mubr.msk.f32.gmra.mxu0 %vm1019_vm5, %v3128_v22  ;;  %v1346_v50 = vadd.f32 %v2276_v23, %v3189_v14  ;;  %1425 = vrot.lane.b32.xlu0 %v1331_v9, %s2448_s12  ;;  %v654_v22 = vpop.permute.xlu1 %653 }
 0x162   : > { %2308 = vmatprep.mubr.msk.f32.mxu0 %vm1019_vm5, %v774_v55  ;;  %v1340_v11 = vpop.f32.mrf.mxu1  ;;  %v764_v15 = vsel %vm746_vm4, %v745_v62, %v654_v22 }
 0x163   : > { %v1341_v43 = vadd.f32 %v3189_v14, %v1340_v11  ;;  %1431 = vrot.lane.b32.xlu1 %v1346_v50, %s2448_s12 }
 0x165   : > { %2309 = vmatmul.mubr.msk.f32.gmra.mxu0 %vm1019_vm5, %v3144_v31  ;;  %1429 = vrot.lane.b32.xlu0 %v1341_v43, %s2448_s12  ;;  %v708_v48 = vpop.permute.xlu1 %707 }
 0x166   : > { %2311 = vmatprep.mubr.msk.f32.mxu0 %vm1019_vm5, %v776_v56  ;;  %v783_v42 = vsel %vm765_vm3, %v764_v15, %v708_v48 }
 0x169   : > { %2312 = vmatmul.mubr.msk.f32.gmra.mxu0 %vm1019_vm5, %v777_v44 }
 0x16a   : > { %2314 = vmatprep.mubr.msk.f32.mxu0 %vm1019_vm5, %v778_v18 }
 0x16b   : > { %v2279_v49 = vpop.f32.mrf.mxu1 }
 0x16c   : > { %v1356_v0 = vadd.f32 %v2279_v49, %v3189_v14 }
 0x16d   : > { %2315 = vmatmul.mubr.msk.f32.gmra.mxu0 %vm1019_vm5, %v779_v3  ;;  %v1350_v47 = vpop.f32.mrf.mxu1 }
 0x16e   : > { %2317 = vmatprep.mubr.msk.f32.mxu0 %vm1019_vm5, %v780_v16  ;;  %v1351_v25 = vadd.f32 %v3189_v14, %v1350_v47  ;;  %1435 = vrot.lane.b32.xlu1 %v1356_v0, %s2448_s12 }
 0x170   : > { %1433 = vrot.lane.b32.xlu0 %v1351_v25, %s2448_s12 }
 0x171   : > { %2318 = vmatmul.mubr.msk.f32.gmra.mxu0 %vm1019_vm5, %v781_v13 }
 0x172   : > { %2320 = vmatprep.mubr.msk.f32.mxu0 %vm1019_vm5, %v782_v53 }
 0x175   : > { %2321 = vmatmul.mubr.msk.f32.gmra.mxu0 %vm1019_vm5, %v783_v42 }
 0x177   : > { %v2282_v51 = vpop.f32.mrf.mxu1 }
 0x178   : > { %v1366_v41 = vadd.f32 %v2282_v51, %v3189_v14 }
 0x179   : > { %v1360_v31 = vpop.f32.mrf.mxu1 }
 0x17a   : > { %v1361_v55 = vadd.f32 %v3189_v14, %v1360_v31  ;;  %1439 = vrot.lane.b32.xlu1 %v1366_v41, %s2448_s12 }
 0x17c   : > { %1437 = vrot.lane.b32.xlu0 %v1361_v55, %s2448_s12 }
 0x183   : > { %v2285_v57 = vpop.f32.mrf.mxu1 }
 0x184   : > { %v1376_v63 = vadd.f32 %v2285_v57, %v3189_v14 }
 0x185   : > { %v1370_v10 = vpop.f32.mrf.mxu1 }
 0x186   : > { %v1371_v27 = vadd.f32 %v3189_v14, %v1370_v10  ;;  %1443 = vrot.lane.b32.xlu1 %v1376_v63, %s2448_s12 }
 0x188   : > { %1441 = vrot.lane.b32.xlu0 %v1371_v27, %s2448_s12 }
 0x18f   : > { %v2288_v54 = vpop.f32.mrf.mxu1 }
 0x190   : > { %v1386_v37 = vadd.f32 %v2288_v54, %v3189_v14 }
 0x191   : > { %v1380_v58 = vpop.f32.mrf.mxu1 }
 0x192   : > { %v1381_v29 = vadd.f32 %v3189_v14, %v1380_v58  ;;  %1447 = vrot.lane.b32.xlu1 %v1386_v37, %s2448_s12 }
 0x194   : > { %1445 = vrot.lane.b32.xlu0 %v1381_v29, %s2448_s12 }
 0x19b   : > { %v2291_v2 = vpop.f32.mrf.mxu1 }
 0x19c   : > { %v1396_v40 = vadd.f32 %v2291_v2, %v3189_v14 }
 0x19d   : > { %v1390_v44 = vpop.f32.mrf.mxu1 }
 0x19e   : > { %v1391_v56 = vadd.f32 %v3189_v14, %v1390_v44  ;;  %1451 = vrot.lane.b32.xlu1 %v1396_v40, %s2448_s12 }
 0x1a0   : > { %1449 = vrot.lane.b32.xlu0 %v1391_v56, %s2448_s12 }
 0x1a7   : > { %v2294_v39 = vpop.f32.mrf.mxu1 }
 0x1a8   : > { %v1406_v26 = vadd.f32 %v2294_v39, %v3189_v14 }
 0x1a9   : > { %v1400_v4 = vpop.f32.mrf.mxu1 }
 0x1aa   : > { %v1401_v36 = vadd.f32 %v3189_v14, %v1400_v4  ;;  %1455 = vrot.lane.b32.xlu1 %v1406_v26, %s2448_s12 }
 0x1ab   : > { %v2329_v52 = vpop.f32.mrf.mxu1 }
 0x1ac   : > { %v1724_v5 = vadd.f32 %v2329_v52, %v3189_v14  ;;  %1453 = vrot.lane.b32.xlu0 %v1401_v36, %s2448_s12 }
 0x1ad   : > { %v1718_v6 = vpop.f32.mrf.mxu1 }
 0x1ae   : > { %v1719_v7 = vadd.f32 %v3189_v14, %v1718_v6  ;;  %1815 = vrot.lane.b32.xlu1 %v1724_v5, %s2448_s12 }
 0x1af   : > { %v2332_v8 = vpop.f32.mrf.mxu1 }
 0x1b0   : > { %v1734_v61 = vadd.f32 %v2332_v8, %v3189_v14  ;;  %1813 = vrot.lane.b32.xlu0 %v1719_v7, %s2448_s12 }
 0x1b1   : > { %v1728_v3 = vpop.f32.mrf.mxu1 }
 0x1b2   : > { %v1729_v18 = vadd.f32 %v3189_v14, %v1728_v3  ;;  %1819 = vrot.lane.b32.xlu1 %v1734_v61, %s2448_s12 }
 0x1b3   : > { %v2335_v20 = vpop.f32.mrf.mxu1 }
 0x1b4   : > { %v1744_v1 = vadd.f32 %v2335_v20, %v3189_v14  ;;  %1817 = vrot.lane.b32.xlu0 %v1729_v18, %s2448_s12 }
 0x1b5   : > { %v1738_v60 = vpop.f32.mrf.mxu1 }
 0x1b6   : > { %v1739_v21 = vadd.f32 %v3189_v14, %v1738_v60  ;;  %1823 = vrot.lane.b32.xlu1 %v1744_v1, %s2448_s12 }
 0x1b7   : > { %v2338_v28 = vpop.f32.mrf.mxu1 }
 0x1b8   : > { %v1754_v33 = vadd.f32 %v2338_v28, %v3189_v14  ;;  %1821 = vrot.lane.b32.xlu0 %v1739_v21, %s2448_s12  ;;  %v2245_v12 = vpop.f32.mrf.mxu0 }
 0x1b9   : > { %v1748_v32 = vpop.f32.mrf.mxu1  ;;  %v1140_v49 = vadd.f32 %v2245_v12, %v3189_v14 }
 0x1ba   : > { %v1749_v46 = vadd.f32 %v3189_v14, %v1748_v32  ;;  %1827 = vrot.lane.b32.xlu1 %v1754_v33, %s2448_s12  ;;  %v1134_v45 = vpop.f32.mrf.mxu0 }
 0x1bb   : > { %v2341_v34 = vpop.f32.mrf.mxu1  ;;  %v1135_v47 = vadd.f32 %v3189_v14, %v1134_v45 }
 0x1bc   : > { %v1764_v13 = vadd.f32 %v2341_v34, %v3189_v14  ;;  %1825 = vrot.lane.b32.xlu0 %v1749_v46, %s2448_s12 }
 0x1bd   : > { %v1758_v16 = vpop.f32.mrf.mxu1 }
 0x1be   : > { %v1759_v24 = vadd.f32 %v3189_v14, %v1758_v16  ;;  %1831 = vrot.lane.b32.xlu1 %v1764_v13, %s2448_s12 }
 0x1bf   : > { %v2344_v17 = vpop.f32.mrf.mxu1 }
 0x1c0   : > { %v1774_v35 = vadd.f32 %v2344_v17, %v3189_v14  ;;  %1829 = vrot.lane.b32.xlu0 %v1759_v24, %s2448_s12 }
 0x1c1   : > { %v1768_v38 = vpop.f32.mrf.mxu1 }
 0x1c2   : > { %v1769_v9 = vadd.f32 %v3189_v14, %v1768_v38  ;;  %1835 = vrot.lane.b32.xlu1 %v1774_v35, %s2448_s12 }
 0x1c3   : > { %v2347_v23 = vpop.f32.mrf.mxu1 }
 0x1c4   : > { %v1784_v50 = vadd.f32 %v2347_v23, %v3189_v14  ;;  %1833 = vrot.lane.b32.xlu0 %v1769_v9, %s2448_s12 }
 0x1c5   : > { %v1778_v19 = vpop.f32.mrf.mxu1 }
 0x1c6   : > { %v1779_v11 = vadd.f32 %v3189_v14, %v1778_v19  ;;  %1839 = vrot.lane.b32.xlu1 %v1784_v50, %s2448_s12 }
 0x1c8   : > { %v2350_v43 = vpop.f32.mrf.mxu1  ;;  %1837 = vrot.lane.b32.xlu0 %v1779_v11, %s2448_s12 }
 0x1c9   : > { %v1794_v59 = vadd.f32 %v2350_v43, %v3189_v14 }
 0x1ca   : > { %v1788_v22 = vpop.f32.mrf.mxu1 }
 0x1cb   : > { %v1789_v62 = vadd.f32 %v3189_v14, %v1788_v22  ;;  %1843 = vrot.lane.b32.xlu1 %v1794_v59, %s2448_s12 }
 0x1cd   : > { %1841 = vrot.lane.b32.xlu0 %v1789_v62, %s2448_s12  ;;  %v2248_v30 = vpop.f32.mrf.mxu0 }
 0x1ce   : > { %v1150_v25 = vadd.f32 %v2248_v30, %v3189_v14 }
 0x1cf   : > { %v1144_v53 = vpop.f32.mrf.mxu0 }
 0x1d0   : > { %v1145_v41 = vadd.f32 %v3189_v14, %v1144_v53 }
 0x1d1   : > { %v1428_v0 = vpop.permute.xlu1 %1427 }
 0x1d2   : > { %v1474_v15 = vsel %vm727_vm2, %v1140_v49, %v1428_v0 }
 0x1d3   : > { %1878 = vst.msk [vmem:[%s3285_s19 + $0x8] sm:$0xff] %vm746_vm4, %v1474_v15  ;;  %v1426_v48 = vpop.permute.xlu0 %1425 }
 0x1d4   : > { %v1473_v42 = vsel %vm727_vm2, %v1135_v47, %v1426_v48 }
 0x1d5   : > { %1877 = vst.msk [vmem:[%s3285_s19] sm:$0xff] %vm746_vm4, %v1473_v42  ;;  %v1432_v51 = vpop.permute.xlu1 %1431 }
 0x1d6   : > { %v1476_v31 = vsel %vm727_vm2, %v1150_v25, %v1432_v51 }
 0x1d7   : > { %1882 = vst.msk [vmem:[%s3285_s19 + $0x28] sm:$0xff] %vm746_vm4, %v1476_v31  ;;  %v1430_v55 = vpop.permute.xlu0 %1429 }
 0x1d8   : > { %v1475_v57 = vsel %vm727_vm2, %v1145_v41, %v1430_v55 }
 0x1d9   : > { %1881 = vst.msk [vmem:[%s3285_s19 + $0x20] sm:$0xff] %vm746_vm4, %v1475_v57  ;;  %v2251_v63 = vpop.f32.mrf.mxu0 }
 0x1da   : > { %v1160_v27 = vadd.f32 %v2251_v63, %v3189_v14 }
 0x1db   : > { %v1154_v10 = vpop.f32.mrf.mxu0 }
 0x1dc   : > { %v1155_v37 = vadd.f32 %v3189_v14, %v1154_v10 }
 0x1e0   : > { %v1436_v54 = vpop.permute.xlu1 %1435 }
 0x1e1   : > { %v1478_v58 = vsel %vm727_vm2, %v1160_v27, %v1436_v54 }
 0x1e2   : > { %1886 = vst.msk [vmem:[%s3285_s19 + $0x48] sm:$0xff] %vm746_vm4, %v1478_v58  ;;  %v1434_v29 = vpop.permute.xlu0 %1433 }
 0x1e3   : > { %v1477_v2 = vsel %vm727_vm2, %v1155_v37, %v1434_v29 }
 0x1e4   : > { %1885 = vst.msk [vmem:[%s3285_s19 + $0x40] sm:$0xff] %vm746_vm4, %v1477_v2 }
 0x1e5   : > { %v2254_v40 = vpop.f32.mrf.mxu0 }
 0x1e6   : > { %v1170_v56 = vadd.f32 %v2254_v40, %v3189_v14 }
 0x1e7   : > { %v1164_v44 = vpop.f32.mrf.mxu0 }
 0x1e8   : > { %v1165_v26 = vadd.f32 %v3189_v14, %v1164_v44 }
 0x1ec   : > { %v1440_v39 = vpop.permute.xlu1 %1439 }
 0x1ed   : > { %v1480_v4 = vsel %vm727_vm2, %v1170_v56, %v1440_v39 }
 0x1ee   : > { %1890 = vst.msk [vmem:[%s3285_s19 + $0x68] sm:$0xff] %vm746_vm4, %v1480_v4  ;;  %v1438_v36 = vpop.permute.xlu0 %1437 }
 0x1ef   : > { %v1479_v52 = vsel %vm727_vm2, %v1165_v26, %v1438_v36 }
 0x1f0   : > { %1889 = vst.msk [vmem:[%s3285_s19 + $0x60] sm:$0xff] %vm746_vm4, %v1479_v52 }
 0x1f1   : > { %v2257_v5 = vpop.f32.mrf.mxu0 }
 0x1f2   : > { %v1180_v7 = vadd.f32 %v2257_v5, %v3189_v14 }
 0x1f3   : > { %v1174_v6 = vpop.f32.mrf.mxu0 }
 0x1f4   : > { %v1175_v61 = vadd.f32 %v3189_v14, %v1174_v6 }
 0x1f8   : > { %v1444_v8 = vpop.permute.xlu1 %1443 }
 0x1f9   : > { %v1482_v3 = vsel %vm727_vm2, %v1180_v7, %v1444_v8 }
 0x1fa   : > { %1894 = vst.msk [vmem:[%s3285_s19 + $0x88] sm:$0xff] %vm746_vm4, %v1482_v3  ;;  %v1442_v18 = vpop.permute.xlu0 %1441 }
 0x1fb   : > { %v1481_v20 = vsel %vm727_vm2, %v1175_v61, %v1442_v18 }
 0x1fc   : > { %1893 = vst.msk [vmem:[%s3285_s19 + $0x80] sm:$0xff] %vm746_vm4, %v1481_v20 }
 0x1fd   : > { %v2260_v1 = vpop.f32.mrf.mxu0 }
 0x1fe   : > { %v1190_v21 = vadd.f32 %v2260_v1, %v3189_v14 }
 0x1ff   : > { %v1184_v60 = vpop.f32.mrf.mxu0 }
 0x200   : > { %v1185_v33 = vadd.f32 %v3189_v14, %v1184_v60 }
 0x204   : > { %v1448_v28 = vpop.permute.xlu1 %1447 }
 0x205   : > { %v1484_v32 = vsel %vm727_vm2, %v1190_v21, %v1448_v28 }
 0x206   : > { %1898 = vst.msk [vmem:[%s3285_s19 + $0xa8] sm:$0xff] %vm746_vm4, %v1484_v32  ;;  %v1446_v46 = vpop.permute.xlu0 %1445 }
 0x207   : > { %v1483_v34 = vsel %vm727_vm2, %v1185_v33, %v1446_v46 }
 0x208   : > { %1897 = vst.msk [vmem:[%s3285_s19 + $0xa0] sm:$0xff] %vm746_vm4, %v1483_v34 }
 0x209   : > { %v2263_v13 = vpop.f32.mrf.mxu0 }
 0x20a   : > { %v1200_v24 = vadd.f32 %v2263_v13, %v3189_v14 }
 0x20b   : > { %v1194_v16 = vpop.f32.mrf.mxu0 }
 0x20c   : > { %v1195_v35 = vadd.f32 %v3189_v14, %v1194_v16 }
 0x210   : > { %v1452_v17 = vpop.permute.xlu1 %1451 }
 0x211   : > { %v1486_v38 = vsel %vm727_vm2, %v1200_v24, %v1452_v17 }
 0x212   : > { %1902 = vst.msk [vmem:[%s3285_s19 + $0xc8] sm:$0xff] %vm746_vm4, %v1486_v38  ;;  %v1450_v9 = vpop.permute.xlu0 %1449 }
 0x213   : > { %v1485_v23 = vsel %vm727_vm2, %v1195_v35, %v1450_v9 }
 0x214   : > { %1901 = vst.msk [vmem:[%s3285_s19 + $0xc0] sm:$0xff] %vm746_vm4, %v1485_v23 }
 0x215   : > { %v2266_v50 = vpop.f32.mrf.mxu0 }
 0x216   : > { %v1210_v59 = vadd.f32 %v2266_v50, %v3189_v14 }
 0x217   : > { %v1204_v19 = vpop.f32.mrf.mxu0 }
 0x218   : > { %v1205_v62 = vadd.f32 %v3189_v14, %v1204_v19 }
 0x219   : > { %v2301_v11 = vpop.f32.mrf.mxu0 }
 0x21a   : > { %v1570_v0 = vadd.f32 %v2301_v11, %v3189_v14 }
 0x21b   : > { %v1564_v43 = vpop.f32.mrf.mxu0 }
 0x21c   : > { %v1456_v22 = vpop.permute.xlu1 %1455  ;;  %v1565_v48 = vadd.f32 %v3189_v14, %v1564_v43 }
 0x21d   : > { %v2304_v12 = vpop.f32.mrf.mxu0  ;;  %v1488_v45 = vsel %vm727_vm2, %v1210_v59, %v1456_v22 }
 0x21e   : > { %1906 = vst.msk [vmem:[%s3285_s19 + $0xe8] sm:$0xff] %vm746_vm4, %v1488_v45  ;;  %v1454_v49 = vpop.permute.xlu0 %1453  ;;  %v1580_v41 = vadd.f32 %v2304_v12, %v3189_v14 }
 0x21f   : > { %v1574_v30 = vpop.f32.mrf.mxu0  ;;  %v1487_v47 = vsel %vm727_vm2, %v1205_v62, %v1454_v49 }
 0x220   : > { %1905 = vst.msk [vmem:[%s3285_s19 + $0xe0] sm:$0xff] %vm746_vm4, %v1487_v47  ;;  %v1816_v53 = vpop.permute.xlu1 %1815  ;;  %v1575_v63 = vadd.f32 %v3189_v14, %v1574_v30 }
 0x221   : > { %v2307_v15 = vpop.f32.mrf.mxu0  ;;  %v1862_v25 = vsel %vm727_vm2, %v1570_v0, %v1816_v53 }
 0x222   : > { %1880 = vst.msk [vmem:[%s3285_s19 + $0x18] sm:$0xff] %vm746_vm4, %v1862_v25  ;;  %v1814_v51 = vpop.permute.xlu0 %1813  ;;  %v1590_v37 = vadd.f32 %v2307_v15, %v3189_v14 }
 0x223   : > { %v1584_v42 = vpop.f32.mrf.mxu0  ;;  %v1861_v31 = vsel %vm727_vm2, %v1565_v48, %v1814_v51 }
 0x224   : > { %1879 = vst.msk [vmem:[%s3285_s19 + $0x10] sm:$0xff] %vm746_vm4, %v1861_v31  ;;  %v1820_v57 = vpop.permute.xlu1 %1819  ;;  %v1585_v40 = vadd.f32 %v3189_v14, %v1584_v42 }
 0x225   : > { %v2310_v55 = vpop.f32.mrf.mxu0  ;;  %v1864_v10 = vsel %vm727_vm2, %v1580_v41, %v1820_v57 }
 0x226   : > { %1884 = vst.msk [vmem:[%s3285_s19 + $0x38] sm:$0xff] %vm746_vm4, %v1864_v10  ;;  %v1818_v54 = vpop.permute.xlu0 %1817  ;;  %v1600_v26 = vadd.f32 %v2310_v55, %v3189_v14 }
 0x227   : > { %v1594_v27 = vpop.f32.mrf.mxu0  ;;  %v1863_v58 = vsel %vm727_vm2, %v1575_v63, %v1818_v54 }
 0x228   : > { %1883 = vst.msk [vmem:[%s3285_s19 + $0x30] sm:$0xff] %vm746_vm4, %v1863_v58  ;;  %v1824_v2 = vpop.permute.xlu1 %1823  ;;  %v1595_v5 = vadd.f32 %v3189_v14, %v1594_v27 }
 0x229   : > { %v2313_v29 = vpop.f32.mrf.mxu0  ;;  %v1866_v44 = vsel %vm727_vm2, %v1590_v37, %v1824_v2 }
 0x22a   : > { %1888 = vst.msk [vmem:[%s3285_s19 + $0x58] sm:$0xff] %vm746_vm4, %v1866_v44  ;;  %v1822_v39 = vpop.permute.xlu0 %1821  ;;  %v1610_v61 = vadd.f32 %v2313_v29, %v3189_v14 }
 0x22b   : > { %v1604_v56 = vpop.f32.mrf.mxu0  ;;  %v1865_v4 = vsel %vm727_vm2, %v1585_v40, %v1822_v39 }
 0x22c   : > { %1887 = vst.msk [vmem:[%s3285_s19 + $0x50] sm:$0xff] %vm746_vm4, %v1865_v4  ;;  %v1828_v52 = vpop.permute.xlu1 %1827  ;;  %v1605_v1 = vadd.f32 %v3189_v14, %v1604_v56 }
 0x22d   : > { %v2316_v36 = vpop.f32.mrf.mxu0  ;;  %v1868_v6 = vsel %vm727_vm2, %v1600_v26, %v1828_v52 }
 0x22e   : > { %1892 = vst.msk [vmem:[%s3285_s19 + $0x78] sm:$0xff] %vm746_vm4, %v1868_v6  ;;  %v1826_v8 = vpop.permute.xlu0 %1825  ;;  %v1620_v33 = vadd.f32 %v2316_v36, %v3189_v14 }
 0x22f   : > { %v1614_v7 = vpop.f32.mrf.mxu0  ;;  %v1867_v3 = vsel %vm727_vm2, %v1595_v5, %v1826_v8 }
 0x230   : > { %1891 = vst.msk [vmem:[%s3285_s19 + $0x70] sm:$0xff] %vm746_vm4, %v1867_v3  ;;  %v1832_v20 = vpop.permute.xlu1 %1831  ;;  %v1615_v34 = vadd.f32 %v3189_v14, %v1614_v7 }
 0x231   : > { %v2319_v18 = vpop.f32.mrf.mxu0  ;;  %v1870_v60 = vsel %vm727_vm2, %v1610_v61, %v1832_v20 }
 0x232   : > { %1896 = vst.msk [vmem:[%s3285_s19 + $0x98] sm:$0xff] %vm746_vm4, %v1870_v60  ;;  %v1830_v28 = vpop.permute.xlu0 %1829  ;;  %v1630_v17 = vadd.f32 %v2319_v18, %v3189_v14 }
 0x233   : > { %v1624_v21 = vpop.f32.mrf.mxu0  ;;  %v1869_v32 = vsel %vm727_vm2, %v1605_v1, %v1830_v28 }
 0x234   : > { %1895 = vst.msk [vmem:[%s3285_s19 + $0x90] sm:$0xff] %vm746_vm4, %v1869_v32  ;;  %v1836_v46 = vpop.permute.xlu1 %1835  ;;  %v1625_v9 = vadd.f32 %v3189_v14, %v1624_v21 }
 0x235   : > { %v1872_v13 = vsel %vm727_vm2, %v1620_v33, %v1836_v46  ;;  %v2322_v16 = vpop.f32.mrf.mxu0 }
 0x236   : > { %1900 = vst.msk [vmem:[%s3285_s19 + $0xb8] sm:$0xff] %vm746_vm4, %v1872_v13  ;;  %v1834_v24 = vpop.permute.xlu0 %1833  ;;  %v1640_v11 = vadd.f32 %v2322_v16, %v3189_v14 }
 0x237   : > { %v1871_v35 = vsel %vm727_vm2, %v1615_v34, %v1834_v24  ;;  %v1634_v50 = vpop.f32.mrf.mxu0 }
 0x238   : > { %1899 = vst.msk [vmem:[%s3285_s19 + $0xb0] sm:$0xff] %vm746_vm4, %v1871_v35  ;;  %v1840_v38 = vpop.permute.xlu1 %1839  ;;  %v1635_v12 = vadd.f32 %v3189_v14, %v1634_v50 }
 0x239   : > { %v1874_v23 = vsel %vm727_vm2, %v1630_v17, %v1840_v38 }
 0x23a   : > { %1904 = vst.msk [vmem:[%s3285_s19 + $0xd8] sm:$0xff] %vm746_vm4, %v1874_v23  ;;  %v1838_v19 = vpop.permute.xlu0 %1837 }
 0x23b   : > { %v1873_v43 = vsel %vm727_vm2, %v1625_v9, %v1838_v19 }
 0x23c   : > { %1903 = vst.msk [vmem:[%s3285_s19 + $0xd0] sm:$0xff] %vm746_vm4, %v1873_v43 }
 0x23d   : > { %v1844_v59 = vpop.permute.xlu1 %1843 }
 0x23e   : > { %v1876_v22 = vsel %vm727_vm2, %v1640_v11, %v1844_v59 }
 0x23f   : > { %1908 = vst.msk [vmem:[%s3285_s19 + $0xf8] sm:$0xff] %vm746_vm4, %v1876_v22  ;;  %v1842_v62 = vpop.permute.xlu0 %1841 }
 0x240   : > { %v1875_v45 = vsel %vm727_vm2, %v1635_v12, %v1842_v62 }
 0x241   : > { %1907 = vst.msk [vmem:[%s3285_s19 + $0xf0] sm:$0xff] %vm746_vm4, %v1875_v45 }
 0x242 PF: > { %s15_s22 = sadd.s32 1, %s2444_s22   ;;  %s3437_s18 = smov %s2436_s20 }
 0x243   : > { %p12_p13 = scmp.ge.s32.totalorder %s15_s22, 6   ;;  %s3438_s19 = smov %s2440_s21 }
 0x244   : > { %s3439_s20 = smov %s3442_s23  ;;  %s3440_s21 = smov %s3446_s24 }
 0x245   :  { %14 = sbr.rel (!%p12_p13) target bundleno = 3 (0x3), region = 79 }

</bundles_post_ra>
